<compile_context>
chip_gen: v6e
topology: v6e:2x2x1
jax: 0.10.0
libtpu: 0.0.40
codegen_flags: <defaults>
</compile_context>

<pallas_src>
import functools

import numpy as np

import jax
import jax.numpy as jnp
from jax import lax
from jax.experimental import pallas as pl
from jax.experimental.pallas import tpu as pltpu


# ----------------------------------------------------------------------------
# One fused kernel: entire encoder + classifier head for b_tile batch samples.
# Activations are (C, b_tile*L) with samples concatenated along the lane axis.
# ----------------------------------------------------------------------------
def _fused_forward_kernel(x_ref, blk_ref, blkt_ref, mask_ref, *refs,
                          n_blocks, L, b_tile, max_pad, eps, mm_dtype):
    out_ref = refs[-1]
    it = iter(refs[:-1])

    def nxt():
        return next(it)[...]

    Nl = b_tile * L
    blk = blk_ref[...]            # (Nl, b_tile)  0/1 per-sample indicator
    blkt = blkt_ref[...]          # (b_tile, Nl)  its transpose
    shift_mask = mask_ref[...]    # (2*max_pad+1, Nl) validity per conv shift

    def conv_ln(x, w, b, gamma, beta, *, K, relu):
        """Conv1d('same') + per-sample LayerNorm((C, L)) + optional ReLU."""
        cin = x.shape[0]
        c_pad = (-cin) % 8                     # sublane-align each k-chunk
        if c_pad:
            x = jnp.concatenate(
                [x, jnp.zeros((c_pad, Nl), jnp.float32)], axis=0)
        cin_p = cin + c_pad
        pad = (K - 1) // 2

        if K == 1:
            slab = x
        else:
            z = jnp.zeros((cin_p, pad), jnp.float32)
            xp = jnp.concatenate([z, x, z], axis=1)        # zero halo
            chunks = []
            for k in range(K):
                off = k - pad
                chunk = xp[:, k:k + Nl]
                if off != 0:
                    # zero the columns that would leak across sample edges
                    m = shift_mask[max_pad + off:max_pad + off + 1, :]
                    chunk = chunk * m
                chunks.append(chunk)
            slab = jnp.concatenate(chunks, axis=0)         # (K*cin_p, Nl)

        # One MXU push, contraction depth K*cin_p, N = b_tile*L, bf16 operands.
        y = jnp.dot(w, slab.astype(mm_dtype),
                    preferred_element_type=jnp.float32) + b  # (Cout, Nl) f32

        # Single-pass per-sample LayerNorm over the (Cout, L) slab.
        cout = y.shape[0]
        n = cout * L
        col = jnp.concatenate([jnp.sum(y, axis=0, keepdims=True),
                               jnp.sum(y * y, axis=0, keepdims=True)], axis=0)
        ss = jnp.dot(col, blk, preferred_element_type=jnp.float32)  # (2, bt)
        mean = ss[0:1, :] * (1.0 / n)
        var = jnp.maximum(ss[1:2, :] * (1.0 / n) - mean * mean, 0.0)
        rstd = lax.rsqrt(var + eps)
        rows = jnp.dot(jnp.concatenate([mean, rstd], axis=0), blkt,
                       preferred_element_type=jnp.float32)          # (2, Nl)
        g = jnp.tile(gamma.astype(jnp.float32), (1, b_tile))
        bt = jnp.tile(beta.astype(jnp.float32), (1, b_tile))
        y = (y - rows[0:1, :]) * rows[1:2, :] * g + bt
        if relu:
            y = jnp.maximum(y, 0.0)
        return y

    h = x_ref[0].astype(jnp.float32)                       # (Cin, b_tile*L)

    # Stem: Conv1d(k=9, 'same') + LN + ReLU.
    h = conv_ln(h, nxt(), nxt(), nxt(), nxt(), K=9, relu=True)

    # Encoder ResBlockMAE stack (static structure -> unrolled).
    for _ in range(n_blocks):
        ident = conv_ln(h, nxt(), nxt(), nxt(), nxt(), K=1, relu=False)
        m = h
        for _ in range(3):
            m = conv_ln(m, nxt(), nxt(), nxt(), nxt(), K=3, relu=True)
        h = jnp.maximum(ident + m, 0.0)                    # residual + ReLU

    # Classifier head: AvgPool1d(L) (as a matmul) -> Linear -> ReLU -> Linear.
    w1, b1, w2, b2 = nxt(), nxt(), nxt(), nxt()
    pooled = jnp.dot(h, blk, preferred_element_type=jnp.float32) * (1.0 / L)
    h1 = jnp.dot(w1, pooled.astype(mm_dtype),
                 preferred_element_type=jnp.float32) + b1   # (n_hl, b_tile)
    h1 = jnp.maximum(h1, 0.0)
    out = jnp.dot(w2, h1.astype(mm_dtype),
                  preferred_element_type=jnp.float32) + b2  # (1, b_tile)
    out_ref[0] = out.astype(out_ref.dtype)                  # lane-dense store


def mae_alpha_classifier(params, x, in_channels, winsize, *,
                         b_tile=None, use_bf16=True, eps=1e-5):
    """Full MAEAlphaClassifier forward in a single fused Pallas kernel."""
    x = x.reshape(-1, in_channels, winsize).astype(jnp.float32)
    B, Cin, L = x.shape
    n_blocks = len(params["blocks"])

    # ---- batch tiling -------------------------------------------------
    if b_tile is None:
        # target >= 512 matmul lanes per grid step; at production keep the
        # grid length >= 2 so v7x's two TensorCores both get work.
        b_tile = max(1, min(B, -(-512 // L)))
    b_tile = max(1, min(b_tile, B))
    num_steps = -(-B // b_tile)
    B_pad = num_steps * b_tile
    if B_pad != B:
        x = jnp.concatenate(
            [x, jnp.zeros((B_pad - B, Cin, L), x.dtype)], axis=0)
    Nl = b_tile * L

    # Lane-dense per-step input slab: samples concatenated along lanes.
    x_steps = (x.reshape(num_steps, b_tile, Cin, L)
                .transpose(0, 2, 1, 3)
                .reshape(num_steps, Cin, Nl))

    # ---- parameters: flattened, lane-dense, MXU dtype ------------------
    mm_dtype = jnp.bfloat16 if use_bf16 else jnp.float32
    flat = []
    conv_ks = []
    max_slab_rows = 0
    max_cout = 0

    def add_conv(w, b):
        nonlocal max_slab_rows, max_cout
        cout, cin, k = w.shape
        assert k % 2 == 1, "'same' padding here assumes an odd kernel size"
        conv_ks.append(k)
        c_pad = (-cin) % 8
        if c_pad:                       # zero cols matching the slab row pad
            w = jnp.concatenate(
                [w, jnp.zeros((cout, c_pad, k), w.dtype)], axis=1)
        wf = jnp.transpose(w, (0, 2, 1)).reshape(cout, k * (cin + c_pad))
        flat.append(wf.astype(mm_dtype))
        flat.append(b.reshape(cout, 1).astype(jnp.float32))
        max_slab_rows = max(max_slab_rows, k * (cin + c_pad))
        max_cout = max(max_cout, cout)

    def add_ln(g, bt):
        flat.append(g.astype(mm_dtype))     # cast back to f32 inside kernel
        flat.append(bt.astype(mm_dtype))

    (w, b), (g, bt) = params["stem_conv"], params["stem_ln"]
    add_conv(w, b)
    add_ln(g, bt)
    for blk_p in params["blocks"]:
        add_conv(*blk_p["id_conv"])
        add_ln(*blk_p["id_ln"])
        for ck, lk in (("c1", "ln1"), ("c2", "ln2"), ("c3", "ln3")):
            add_conv(*blk_p[ck])
            add_ln(*blk_p[lk])

    (w1, b1), (w2, b2) = params["fc1"], params["fc2"]
    n_hl = w1.shape[0]
    flat += [w1.astype(mm_dtype), b1.reshape(n_hl, 1).astype(jnp.float32),
             w2.astype(mm_dtype), b2.reshape(1, 1).astype(jnp.float32)]

    # ---- shared constants: sample indicator + conv-shift masks ---------
    max_pad = (max(conv_ks) - 1) // 2
    col = np.arange(Nl)
    within = col % L
    sample = col // L
    blk_np = (sample[:, None] == np.arange(b_tile)[None, :]).astype(np.float32)
    offs = np.arange(-max_pad, max_pad + 1)
    mask_np = ((within[None, :] + offs[:, None] >= 0)
               & (within[None, :] + offs[:, None] < L)).astype(np.float32)
    blk_mat = jnp.asarray(blk_np)            # (Nl, b_tile)
    blkt_mat = jnp.asarray(blk_np.T)         # (b_tile, Nl)
    shift_mask = jnp.asarray(mask_np)        # (2*max_pad+1, Nl)

    # ---- BlockSpecs -----------------------------------------------------
    in_specs = [
        pl.BlockSpec((1, Cin, Nl), lambda i: (i, 0, 0)),
        pl.BlockSpec(blk_mat.shape, lambda i: (0, 0)),
        pl.BlockSpec(blkt_mat.shape, lambda i: (0, 0)),
        pl.BlockSpec(shift_mask.shape, lambda i: (0, 0)),
    ]
    for a in flat:
        in_specs.append(pl.BlockSpec(a.shape, lambda i: (0, 0)))

    # ---- VMEM budget ----------------------------------------------------
    const_bytes = sum(int(a.size) * a.dtype.itemsize
                      for a in [blk_mat, blkt_mat, shift_mask] + flat)
    act_bytes = (6 * max_slab_rows + 10 * max_cout) * Nl * 4
    vmem_limit = int(min(48 << 20,
                         max(32 << 20,
                             2 * const_bytes + 2 * Cin * Nl * 4
                             + act_bytes + (2 << 20))))

    kernel = functools.partial(
        _fused_forward_kernel, n_blocks=n_blocks, L=L, b_tile=b_tile,
        max_pad=max_pad, eps=eps, mm_dtype=mm_dtype)

    out = pl.pallas_call(
        kernel,
        out_shape=jax.ShapeDtypeStruct((num_steps, 1, b_tile), jnp.float32),
        grid=(num_steps,),
        in_specs=in_specs,
        out_specs=pl.BlockSpec((1, 1, b_tile), lambda i: (i, 0, 0)),
        compiler_params=pltpu.CompilerParams(
            dimension_semantics=("parallel",),
            vmem_limit_bytes=vmem_limit),
    )(x_steps, blk_mat, blkt_mat, shift_mask, *flat)

    return out.reshape(B_pad, 1)[:B]


# ----------------------------------------------------------------------------
# Parameter construction (deterministic, in-script).
# ----------------------------------------------------------------------------
def init_params(key, in_channels, dims, winsize, n_hl):
    keys = iter(jax.random.split(key, 128))

    def conv_p(cout, cin, k):
        w = jax.random.normal(next(keys), (cout, cin, k), jnp.float32)
        w = w / jnp.sqrt(jnp.float32(cin * k))
        b = 0.01 * jax.random.normal(next(keys), (cout,), jnp.float32)
        return w, b

    def ln_p(c, l):
        g = 1.0 + 0.1 * jax.random.normal(next(keys), (c, l), jnp.float32)
        bt = 0.1 * jax.random.normal(next(keys), (c, l), jnp.float32)
        return g, bt

    params = {
        "stem_conv": conv_p(dims[0], in_channels, 9),
        "stem_ln": ln_p(dims[0], winsize),
        "blocks": [],
    }
    for i in range(len(dims) - 1):
        cin, cout = dims[i], dims[i + 1]
        params["blocks"].append(dict(
            id_conv=conv_p(cout, cin, 1), id_ln=ln_p(cout, winsize),
            c1=conv_p(cout, cin, 3), ln1=ln_p(cout, winsize),
            c2=conv_p(cout, cout, 3), ln2=ln_p(cout, winsize),
            c3=conv_p(cout, cout, 3), ln3=ln_p(cout, winsize),
        ))
    params["fc1"] = (
        jax.random.normal(next(keys), (n_hl, dims[-1]), jnp.float32)
        / jnp.sqrt(jnp.float32(dims[-1])),
        0.01 * jax.random.normal(next(keys), (n_hl,), jnp.float32),
    )
    params["fc2"] = (
        jax.random.normal(next(keys), (1, n_hl), jnp.float32)
        / jnp.sqrt(jnp.float32(n_hl)),
        0.01 * jax.random.normal(next(keys), (1,), jnp.float32),
    )
    return params


# ----------------------------------------------------------------------------
# Pure-JAX reference for verification.
# ----------------------------------------------------------------------------
def _ref_conv_ln_relu(x, w, b, gamma, beta, apply_relu, eps=1e-5):
    K = w.shape[2]
    pad = (K - 1) // 2
    L = x.shape[2]
    xp = jnp.pad(x, ((0, 0), (0, 0), (pad, pad)))
    y = jnp.zeros((x.shape[0], w.shape[0], L), jnp.float32)
    for k in range(K):
        y = y + jnp.einsum("oi,bil->bol", w[:, :, k], xp[:, :, k:k + L])
    y = y + b[None, :, None]
    mean = jnp.mean(y, axis=(1, 2), keepdims=True)
    var = jnp.mean((y - mean) ** 2, axis=(1, 2), keepdims=True)
    y = (y - mean) / jnp.sqrt(var + eps)
    y = y * gamma[None] + beta[None]
    if apply_relu:
        y = jnp.maximum(y, 0.0)
    return y


def ref_forward(params, x, in_channels, winsize):
    x = x.reshape(-1, in_channels, winsize)
    (w, b), (g, bt) = params["stem_conv"], params["stem_ln"]
    h = _ref_conv_ln_relu(x, w, b, g, bt, True)
    for blk in params["blocks"]:
        (wi, bi), (gi, bti) = blk["id_conv"], blk["id_ln"]
        ident = _ref_conv_ln_relu(h, wi, bi, gi, bti, False)
        m = h
        for ck, lk in (("c1", "ln1"), ("c2", "ln2"), ("c3", "ln3")):
            (wc, bc), (gc, btc) = blk[ck], blk[lk]
            m = _ref_conv_ln_relu(m, wc, bc, gc, btc, True)
        h = jnp.maximum(ident + m, 0.0)
    (w1, b1), (w2, b2) = params["fc1"], params["fc2"]
    pooled = jnp.mean(h, axis=2)
    h1 = jnp.maximum(pooled @ w1.T + b1, 0.0)
    return h1 @ w2.T + b2


if __name__ == "__main__":
    # Small config consistent with the module: winsize=16, in_channels=4,
    # dims=[8, 16] (one ResBlockMAE in the encoder), n_hl=10, batch=8
    # (b_tile=4 -> 2 grid steps, samples folded into the matmul N dimension).
    B, in_channels, winsize = 8, 4, 16
    dims, n_hl = [8, 16], 10

    key = jax.random.PRNGKey(0)
    kx, kp = jax.random.split(key)
    x = jax.random.normal(kx, (B, in_channels, winsize), jnp.float32)
    params = init_params(kp, in_channels, dims, winsize, n_hl)

    ref = ref_forward(params, x, in_channels, winsize)

    # 1) f32 MXU path: tight structural check against the f32 reference.
    fwd_f32 = jax.jit(functools.partial(
        mae_alpha_classifier, in_channels=in_channels, winsize=winsize,
        b_tile=4, use_bf16=False))
    out_f32 = jax.block_until_ready(fwd_f32(params, x))
    assert out_f32.shape == (B, 1)
    assert jnp.allclose(out_f32, ref, atol=1e-2, rtol=1e-2), (out_f32, ref)

    # 2) bf16 MXU path (production default), uneven batch to exercise the
    #    batch-padding path; loose tolerance for bf16 operands.
    B2 = 6
    fwd_bf16 = jax.jit(functools.partial(
        mae_alpha_classifier, in_channels=in_channels, winsize=winsize,
        b_tile=4, use_bf16=True))
    out_bf16 = jax.block_until_ready(fwd_bf16(params, x[:B2]))
    assert out_bf16.shape == (B2, 1)
    assert bool(jnp.all(jnp.isfinite(out_bf16)))
    assert jnp.allclose(out_bf16, ref[:B2], atol=0.15, rtol=0.15), (
        out_bf16, ref[:B2])

    print("KERNEL_OK")
</pallas_src>

<mosaic_0001>
module attributes {stable_mosaic.version = 11 : i64} {
  func.func @_fused_forward_kernel(%arg0: i32, %arg1: memref<1x4x64xf32, #tpu.memory_space<vmem>>, %arg2: memref<64x4xf32, #tpu.memory_space<vmem>>, %arg3: memref<4x64xf32, #tpu.memory_space<vmem>>, %arg4: memref<9x64xf32, #tpu.memory_space<vmem>>, %arg5: memref<8x72xf32, #tpu.memory_space<vmem>>, %arg6: memref<8x1xf32, #tpu.memory_space<vmem>>, %arg7: memref<8x16xf32, #tpu.memory_space<vmem>>, %arg8: memref<8x16xf32, #tpu.memory_space<vmem>>, %arg9: memref<16x8xf32, #tpu.memory_space<vmem>>, %arg10: memref<16x1xf32, #tpu.memory_space<vmem>>, %arg11: memref<16x16xf32, #tpu.memory_space<vmem>>, %arg12: memref<16x16xf32, #tpu.memory_space<vmem>>, %arg13: memref<16x24xf32, #tpu.memory_space<vmem>>, %arg14: memref<16x1xf32, #tpu.memory_space<vmem>>, %arg15: memref<16x16xf32, #tpu.memory_space<vmem>>, %arg16: memref<16x16xf32, #tpu.memory_space<vmem>>, %arg17: memref<16x48xf32, #tpu.memory_space<vmem>>, %arg18: memref<16x1xf32, #tpu.memory_space<vmem>>, %arg19: memref<16x16xf32, #tpu.memory_space<vmem>>, %arg20: memref<16x16xf32, #tpu.memory_space<vmem>>, %arg21: memref<16x48xf32, #tpu.memory_space<vmem>>, %arg22: memref<16x1xf32, #tpu.memory_space<vmem>>, %arg23: memref<16x16xf32, #tpu.memory_space<vmem>>, %arg24: memref<16x16xf32, #tpu.memory_space<vmem>>, %arg25: memref<10x16xf32, #tpu.memory_space<vmem>>, %arg26: memref<10x1xf32, #tpu.memory_space<vmem>>, %arg27: memref<1x10xf32, #tpu.memory_space<vmem>>, %arg28: memref<1x1xf32, #tpu.memory_space<vmem>>, %arg29: memref<1x1x4xf32, #tpu.memory_space<vmem>>) attributes {dimension_semantics = [#tpu.dimension_semantics<parallel>], iteration_bounds = array<i64: 2>, scalar_prefetch = 0 : i64, scratch_operands = 0 : i64, tpu.core_type = #tpu.core_type<tc>, window_params = [{transform_indices = @transform_0, window_bounds = array<i64: 1, 4, 64>}, {pipeline_mode = #tpu.pipeline_mode<synchronous>, transform_indices = @transform_1, window_bounds = array<i64: 64, 4>}, {pipeline_mode = #tpu.pipeline_mode<synchronous>, transform_indices = @transform_2, window_bounds = array<i64: 4, 64>}, {pipeline_mode = #tpu.pipeline_mode<synchronous>, transform_indices = @transform_3, window_bounds = array<i64: 9, 64>}, {pipeline_mode = #tpu.pipeline_mode<synchronous>, transform_indices = @transform_4, window_bounds = array<i64: 8, 72>}, {pipeline_mode = #tpu.pipeline_mode<synchronous>, transform_indices = @transform_5, window_bounds = array<i64: 8, 1>}, {pipeline_mode = #tpu.pipeline_mode<synchronous>, transform_indices = @transform_6, window_bounds = array<i64: 8, 16>}, {pipeline_mode = #tpu.pipeline_mode<synchronous>, transform_indices = @transform_7, window_bounds = array<i64: 8, 16>}, {pipeline_mode = #tpu.pipeline_mode<synchronous>, transform_indices = @transform_8, window_bounds = array<i64: 16, 8>}, {pipeline_mode = #tpu.pipeline_mode<synchronous>, transform_indices = @transform_9, window_bounds = array<i64: 16, 1>}, {pipeline_mode = #tpu.pipeline_mode<synchronous>, transform_indices = @transform_10, window_bounds = array<i64: 16, 16>}, {pipeline_mode = #tpu.pipeline_mode<synchronous>, transform_indices = @transform_11, window_bounds = array<i64: 16, 16>}, {pipeline_mode = #tpu.pipeline_mode<synchronous>, transform_indices = @transform_12, window_bounds = array<i64: 16, 24>}, {pipeline_mode = #tpu.pipeline_mode<synchronous>, transform_indices = @transform_13, window_bounds = array<i64: 16, 1>}, {pipeline_mode = #tpu.pipeline_mode<synchronous>, transform_indices = @transform_14, window_bounds = array<i64: 16, 16>}, {pipeline_mode = #tpu.pipeline_mode<synchronous>, transform_indices = @transform_15, window_bounds = array<i64: 16, 16>}, {pipeline_mode = #tpu.pipeline_mode<synchronous>, transform_indices = @transform_16, window_bounds = array<i64: 16, 48>}, {pipeline_mode = #tpu.pipeline_mode<synchronous>, transform_indices = @transform_17, window_bounds = array<i64: 16, 1>}, {pipeline_mode = #tpu.pipeline_mode<synchronous>, transform_indices = @transform_18, window_bounds = array<i64: 16, 16>}, {pipeline_mode = #tpu.pipeline_mode<synchronous>, transform_indices = @transform_19, window_bounds = array<i64: 16, 16>}, {pipeline_mode = #tpu.pipeline_mode<synchronous>, transform_indices = @transform_20, window_bounds = array<i64: 16, 48>}, {pipeline_mode = #tpu.pipeline_mode<synchronous>, transform_indices = @transform_21, window_bounds = array<i64: 16, 1>}, {pipeline_mode = #tpu.pipeline_mode<synchronous>, transform_indices = @transform_22, window_bounds = array<i64: 16, 16>}, {pipeline_mode = #tpu.pipeline_mode<synchronous>, transform_indices = @transform_23, window_bounds = array<i64: 16, 16>}, {pipeline_mode = #tpu.pipeline_mode<synchronous>, transform_indices = @transform_24, window_bounds = array<i64: 10, 16>}, {pipeline_mode = #tpu.pipeline_mode<synchronous>, transform_indices = @transform_25, window_bounds = array<i64: 10, 1>}, {pipeline_mode = #tpu.pipeline_mode<synchronous>, transform_indices = @transform_26, window_bounds = array<i64: 1, 10>}, {pipeline_mode = #tpu.pipeline_mode<synchronous>, transform_indices = @transform_27, window_bounds = array<i64: 1, 1>}, {transform_indices = @transform_28, window_bounds = array<i64: 1, 1, 4>}]} {
    %c0 = arith.constant 0 : index
    %c0_0 = arith.constant 0 : index
    %0 = vector.load %arg2[%c0, %c0_0] : memref<64x4xf32, #tpu.memory_space<vmem>>, vector<64x4xf32>
    %c0_1 = arith.constant 0 : index
    %c0_2 = arith.constant 0 : index
    %1 = vector.load %arg3[%c0_1, %c0_2] : memref<4x64xf32, #tpu.memory_space<vmem>>, vector<4x64xf32>
    %c0_3 = arith.constant 0 : index
    %c0_4 = arith.constant 0 : index
    %2 = vector.load %arg4[%c0_3, %c0_4] : memref<9x64xf32, #tpu.memory_space<vmem>>, vector<9x64xf32>
    %c0_5 = arith.constant 0 : index
    %c0_6 = arith.constant 0 : index
    %c0_7 = arith.constant 0 : index
    %3 = vector.load %arg1[%c0_5, %c0_6, %c0_7] : memref<1x4x64xf32, #tpu.memory_space<vmem>>, vector<1x4x64xf32>
    %4 = vector.shape_cast %3 : vector<1x4x64xf32> to vector<4x64xf32>
    %c0_8 = arith.constant 0 : index
    %c0_9 = arith.constant 0 : index
    %5 = vector.load %arg5[%c0_8, %c0_9] : memref<8x72xf32, #tpu.memory_space<vmem>>, vector<8x72xf32>
    %c0_10 = arith.constant 0 : index
    %c0_11 = arith.constant 0 : index
    %6 = vector.load %arg6[%c0_10, %c0_11] : memref<8x1xf32, #tpu.memory_space<vmem>>, vector<8x1xf32>
    %c0_12 = arith.constant 0 : index
    %c0_13 = arith.constant 0 : index
    %7 = vector.load %arg7[%c0_12, %c0_13] : memref<8x16xf32, #tpu.memory_space<vmem>>, vector<8x16xf32>
    %c0_14 = arith.constant 0 : index
    %c0_15 = arith.constant 0 : index
    %8 = vector.load %arg8[%c0_14, %c0_15] : memref<8x16xf32, #tpu.memory_space<vmem>>, vector<8x16xf32>
    %cst = arith.constant 0.000000e+00 : f32
    %9 = vector.broadcast %cst : f32 to vector<4x64xf32>
    %10 = tpu.concatenate %4, %9 in 0 : vector<4x64xf32>, vector<4x64xf32> -> vector<8x64xf32>
    %cst_16 = arith.constant 0.000000e+00 : f32
    %11 = vector.broadcast %cst_16 : f32 to vector<8x4xf32>
    %12 = tpu.concatenate %11, %10, %11 in 1 : vector<8x4xf32>, vector<8x64xf32>, vector<8x4xf32> -> vector<8x72xf32>
    %13 = vector.extract_strided_slice %12 {offsets = [0, 0], sizes = [8, 64], strides = [1, 1]} : vector<8x72xf32> to vector<8x64xf32>
    %14 = vector.extract_strided_slice %2 {offsets = [0, 0], sizes = [1, 64], strides = [1, 1]} : vector<9x64xf32> to vector<1x64xf32>
    %15 = vector.broadcast %14 : vector<1x64xf32> to vector<8x64xf32>
    %16 = arith.mulf %13, %15 : vector<8x64xf32>
    %17 = vector.extract_strided_slice %12 {offsets = [0, 1], sizes = [8, 64], strides = [1, 1]} : vector<8x72xf32> to vector<8x64xf32>
    %18 = vector.extract_strided_slice %2 {offsets = [1, 0], sizes = [1, 64], strides = [1, 1]} : vector<9x64xf32> to vector<1x64xf32>
    %19 = vector.broadcast %18 : vector<1x64xf32> to vector<8x64xf32>
    %20 = arith.mulf %17, %19 : vector<8x64xf32>
    %21 = vector.extract_strided_slice %12 {offsets = [0, 2], sizes = [8, 64], strides = [1, 1]} : vector<8x72xf32> to vector<8x64xf32>
    %22 = vector.extract_strided_slice %2 {offsets = [2, 0], sizes = [1, 64], strides = [1, 1]} : vector<9x64xf32> to vector<1x64xf32>
    %23 = vector.broadcast %22 : vector<1x64xf32> to vector<8x64xf32>
    %24 = arith.mulf %21, %23 : vector<8x64xf32>
    %25 = vector.extract_strided_slice %12 {offsets = [0, 3], sizes = [8, 64], strides = [1, 1]} : vector<8x72xf32> to vector<8x64xf32>
    %26 = vector.extract_strided_slice %2 {offsets = [3, 0], sizes = [1, 64], strides = [1, 1]} : vector<9x64xf32> to vector<1x64xf32>
    %27 = vector.broadcast %26 : vector<1x64xf32> to vector<8x64xf32>
    %28 = arith.mulf %25, %27 : vector<8x64xf32>
    %29 = vector.extract_strided_slice %12 {offsets = [0, 4], sizes = [8, 64], strides = [1, 1]} : vector<8x72xf32> to vector<8x64xf32>
    %30 = vector.extract_strided_slice %12 {offsets = [0, 5], sizes = [8, 64], strides = [1, 1]} : vector<8x72xf32> to vector<8x64xf32>
    %31 = vector.extract_strided_slice %2 {offsets = [5, 0], sizes = [1, 64], strides = [1, 1]} : vector<9x64xf32> to vector<1x64xf32>
    %32 = vector.broadcast %31 : vector<1x64xf32> to vector<8x64xf32>
    %33 = arith.mulf %30, %32 : vector<8x64xf32>
    %34 = vector.extract_strided_slice %12 {offsets = [0, 6], sizes = [8, 64], strides = [1, 1]} : vector<8x72xf32> to vector<8x64xf32>
    %35 = vector.extract_strided_slice %2 {offsets = [6, 0], sizes = [1, 64], strides = [1, 1]} : vector<9x64xf32> to vector<1x64xf32>
    %36 = vector.broadcast %35 : vector<1x64xf32> to vector<8x64xf32>
    %37 = arith.mulf %34, %36 : vector<8x64xf32>
    %38 = vector.extract_strided_slice %12 {offsets = [0, 7], sizes = [8, 64], strides = [1, 1]} : vector<8x72xf32> to vector<8x64xf32>
    %39 = vector.extract_strided_slice %2 {offsets = [7, 0], sizes = [1, 64], strides = [1, 1]} : vector<9x64xf32> to vector<1x64xf32>
    %40 = vector.broadcast %39 : vector<1x64xf32> to vector<8x64xf32>
    %41 = arith.mulf %38, %40 : vector<8x64xf32>
    %42 = vector.extract_strided_slice %12 {offsets = [0, 8], sizes = [8, 64], strides = [1, 1]} : vector<8x72xf32> to vector<8x64xf32>
    %43 = vector.extract_strided_slice %2 {offsets = [8, 0], sizes = [1, 64], strides = [1, 1]} : vector<9x64xf32> to vector<1x64xf32>
    %44 = vector.broadcast %43 : vector<1x64xf32> to vector<8x64xf32>
    %45 = arith.mulf %42, %44 : vector<8x64xf32>
    %46 = tpu.concatenate %16, %20, %24, %28, %29, %33, %37, %41, %45 in 0 : vector<8x64xf32>, vector<8x64xf32>, vector<8x64xf32>, vector<8x64xf32>, vector<8x64xf32>, vector<8x64xf32>, vector<8x64xf32>, vector<8x64xf32>, vector<8x64xf32> -> vector<72x64xf32>
    %cst_17 = arith.constant dense<0.000000e+00> : vector<8x64xf32>
    %47 = tpu.matmul %5, %46, %cst_17 {dimension_numbers = #tpu.dot_dimension_numbers<[1], [0], [0], [1], [0, 0, 1, 1], [], []>} : vector<8x72xf32>, vector<72x64xf32>, vector<8x64xf32> -> vector<8x64xf32>
    %48 = vector.broadcast %6 : vector<8x1xf32> to vector<8x64xf32>
    %49 = arith.addf %47, %48 : vector<8x64xf32>
    %cst_18 = arith.constant dense<0.000000e+00> : vector<64xf32>
    %50 = vector.multi_reduction <add>, %49, %cst_18 [0] : vector<8x64xf32> to vector<64xf32>
    %51 = vector.shape_cast %50 : vector<64xf32> to vector<1x64xf32>
    %52 = arith.mulf %49, %49 : vector<8x64xf32>
    %cst_19 = arith.constant dense<0.000000e+00> : vector<64xf32>
    %53 = vector.multi_reduction <add>, %52, %cst_19 [0] : vector<8x64xf32> to vector<64xf32>
    %54 = vector.shape_cast %53 : vector<64xf32> to vector<1x64xf32>
    %55 = tpu.concatenate %51, %54 in 0 : vector<1x64xf32>, vector<1x64xf32> -> vector<2x64xf32>
    %cst_20 = arith.constant dense<0.000000e+00> : vector<2x4xf32>
    %56 = tpu.matmul %55, %0, %cst_20 {dimension_numbers = #tpu.dot_dimension_numbers<[1], [0], [0], [1], [0, 0, 1, 1], [], []>} : vector<2x64xf32>, vector<64x4xf32>, vector<2x4xf32> -> vector<2x4xf32>
    %57 = vector.extract_strided_slice %56 {offsets = [0, 0], sizes = [1, 4], strides = [1, 1]} : vector<2x4xf32> to vector<1x4xf32>
    %cst_21 = arith.constant 7.812500e-03 : f32
    %58 = vector.broadcast %cst_21 : f32 to vector<1x4xf32>
    %59 = arith.mulf %57, %58 : vector<1x4xf32>
    %60 = vector.extract_strided_slice %56 {offsets = [1, 0], sizes = [1, 4], strides = [1, 1]} : vector<2x4xf32> to vector<1x4xf32>
    %cst_22 = arith.constant 7.812500e-03 : f32
    %61 = vector.broadcast %cst_22 : f32 to vector<1x4xf32>
    %62 = arith.mulf %60, %61 : vector<1x4xf32>
    %63 = arith.mulf %59, %59 : vector<1x4xf32>
    %64 = arith.subf %62, %63 : vector<1x4xf32>
    %cst_23 = arith.constant 0.000000e+00 : f32
    %65 = vector.broadcast %cst_23 : f32 to vector<1x4xf32>
    %66 = arith.maximumf %64, %65 : vector<1x4xf32>
    %cst_24 = arith.constant 9.99999974E-6 : f32
    %67 = vector.broadcast %cst_24 : f32 to vector<1x4xf32>
    %68 = arith.addf %66, %67 : vector<1x4xf32>
    %69 = math.rsqrt %68 : vector<1x4xf32>
    %70 = tpu.concatenate %59, %69 in 0 : vector<1x4xf32>, vector<1x4xf32> -> vector<2x4xf32>
    %cst_25 = arith.constant dense<0.000000e+00> : vector<2x64xf32>
    %71 = tpu.matmul %70, %1, %cst_25 {dimension_numbers = #tpu.dot_dimension_numbers<[1], [0], [0], [1], [0, 0, 1, 1], [], []>} : vector<2x4xf32>, vector<4x64xf32>, vector<2x64xf32> -> vector<2x64xf32>
    %72 = tpu.concatenate %7, %7, %7, %7 in 1 : vector<8x16xf32>, vector<8x16xf32>, vector<8x16xf32>, vector<8x16xf32> -> vector<8x64xf32>
    %73 = tpu.concatenate %8, %8, %8, %8 in 1 : vector<8x16xf32>, vector<8x16xf32>, vector<8x16xf32>, vector<8x16xf32> -> vector<8x64xf32>
    %74 = vector.extract_strided_slice %71 {offsets = [0, 0], sizes = [1, 64], strides = [1, 1]} : vector<2x64xf32> to vector<1x64xf32>
    %75 = vector.broadcast %74 : vector<1x64xf32> to vector<8x64xf32>
    %76 = arith.subf %49, %75 : vector<8x64xf32>
    %77 = vector.extract_strided_slice %71 {offsets = [1, 0], sizes = [1, 64], strides = [1, 1]} : vector<2x64xf32> to vector<1x64xf32>
    %78 = vector.broadcast %77 : vector<1x64xf32> to vector<8x64xf32>
    %79 = arith.mulf %76, %78 : vector<8x64xf32>
    %80 = arith.mulf %79, %72 : vector<8x64xf32>
    %81 = arith.addf %80, %73 : vector<8x64xf32>
    %cst_26 = arith.constant 0.000000e+00 : f32
    %82 = vector.broadcast %cst_26 : f32 to vector<8x64xf32>
    %83 = arith.maximumf %81, %82 : vector<8x64xf32>
    %c0_27 = arith.constant 0 : index
    %c0_28 = arith.constant 0 : index
    %84 = vector.load %arg9[%c0_27, %c0_28] : memref<16x8xf32, #tpu.memory_space<vmem>>, vector<16x8xf32>
    %c0_29 = arith.constant 0 : index
    %c0_30 = arith.constant 0 : index
    %85 = vector.load %arg10[%c0_29, %c0_30] : memref<16x1xf32, #tpu.memory_space<vmem>>, vector<16x1xf32>
    %c0_31 = arith.constant 0 : index
    %c0_32 = arith.constant 0 : index
    %86 = vector.load %arg11[%c0_31, %c0_32] : memref<16x16xf32, #tpu.memory_space<vmem>>, vector<16x16xf32>
    %c0_33 = arith.constant 0 : index
    %c0_34 = arith.constant 0 : index
    %87 = vector.load %arg12[%c0_33, %c0_34] : memref<16x16xf32, #tpu.memory_space<vmem>>, vector<16x16xf32>
    %cst_35 = arith.constant dense<0.000000e+00> : vector<16x64xf32>
    %88 = tpu.matmul %84, %83, %cst_35 {dimension_numbers = #tpu.dot_dimension_numbers<[1], [0], [0], [1], [0, 0, 1, 1], [], []>} : vector<16x8xf32>, vector<8x64xf32>, vector<16x64xf32> -> vector<16x64xf32>
    %89 = vector.broadcast %85 : vector<16x1xf32> to vector<16x64xf32>
    %90 = arith.addf %88, %89 : vector<16x64xf32>
    %cst_36 = arith.constant dense<0.000000e+00> : vector<64xf32>
    %91 = vector.multi_reduction <add>, %90, %cst_36 [0] : vector<16x64xf32> to vector<64xf32>
    %92 = vector.shape_cast %91 : vector<64xf32> to vector<1x64xf32>
    %93 = arith.mulf %90, %90 : vector<16x64xf32>
    %cst_37 = arith.constant dense<0.000000e+00> : vector<64xf32>
    %94 = vector.multi_reduction <add>, %93, %cst_37 [0] : vector<16x64xf32> to vector<64xf32>
    %95 = vector.shape_cast %94 : vector<64xf32> to vector<1x64xf32>
    %96 = tpu.concatenate %92, %95 in 0 : vector<1x64xf32>, vector<1x64xf32> -> vector<2x64xf32>
    %cst_38 = arith.constant dense<0.000000e+00> : vector<2x4xf32>
    %97 = tpu.matmul %96, %0, %cst_38 {dimension_numbers = #tpu.dot_dimension_numbers<[1], [0], [0], [1], [0, 0, 1, 1], [], []>} : vector<2x64xf32>, vector<64x4xf32>, vector<2x4xf32> -> vector<2x4xf32>
    %98 = vector.extract_strided_slice %97 {offsets = [0, 0], sizes = [1, 4], strides = [1, 1]} : vector<2x4xf32> to vector<1x4xf32>
    %cst_39 = arith.constant 3.906250e-03 : f32
    %99 = vector.broadcast %cst_39 : f32 to vector<1x4xf32>
    %100 = arith.mulf %98, %99 : vector<1x4xf32>
    %101 = vector.extract_strided_slice %97 {offsets = [1, 0], sizes = [1, 4], strides = [1, 1]} : vector<2x4xf32> to vector<1x4xf32>
    %cst_40 = arith.constant 3.906250e-03 : f32
    %102 = vector.broadcast %cst_40 : f32 to vector<1x4xf32>
    %103 = arith.mulf %101, %102 : vector<1x4xf32>
    %104 = arith.mulf %100, %100 : vector<1x4xf32>
    %105 = arith.subf %103, %104 : vector<1x4xf32>
    %cst_41 = arith.constant 0.000000e+00 : f32
    %106 = vector.broadcast %cst_41 : f32 to vector<1x4xf32>
    %107 = arith.maximumf %105, %106 : vector<1x4xf32>
    %cst_42 = arith.constant 9.99999974E-6 : f32
    %108 = vector.broadcast %cst_42 : f32 to vector<1x4xf32>
    %109 = arith.addf %107, %108 : vector<1x4xf32>
    %110 = math.rsqrt %109 : vector<1x4xf32>
    %111 = tpu.concatenate %100, %110 in 0 : vector<1x4xf32>, vector<1x4xf32> -> vector<2x4xf32>
    %cst_43 = arith.constant dense<0.000000e+00> : vector<2x64xf32>
    %112 = tpu.matmul %111, %1, %cst_43 {dimension_numbers = #tpu.dot_dimension_numbers<[1], [0], [0], [1], [0, 0, 1, 1], [], []>} : vector<2x4xf32>, vector<4x64xf32>, vector<2x64xf32> -> vector<2x64xf32>
    %113 = tpu.concatenate %86, %86, %86, %86 in 1 : vector<16x16xf32>, vector<16x16xf32>, vector<16x16xf32>, vector<16x16xf32> -> vector<16x64xf32>
    %114 = tpu.concatenate %87, %87, %87, %87 in 1 : vector<16x16xf32>, vector<16x16xf32>, vector<16x16xf32>, vector<16x16xf32> -> vector<16x64xf32>
    %115 = vector.extract_strided_slice %112 {offsets = [0, 0], sizes = [1, 64], strides = [1, 1]} : vector<2x64xf32> to vector<1x64xf32>
    %116 = vector.broadcast %115 : vector<1x64xf32> to vector<16x64xf32>
    %117 = arith.subf %90, %116 : vector<16x64xf32>
    %118 = vector.extract_strided_slice %112 {offsets = [1, 0], sizes = [1, 64], strides = [1, 1]} : vector<2x64xf32> to vector<1x64xf32>
    %119 = vector.broadcast %118 : vector<1x64xf32> to vector<16x64xf32>
    %120 = arith.mulf %117, %119 : vector<16x64xf32>
    %121 = arith.mulf %120, %113 : vector<16x64xf32>
    %122 = arith.addf %121, %114 : vector<16x64xf32>
    %c0_44 = arith.constant 0 : index
    %c0_45 = arith.constant 0 : index
    %123 = vector.load %arg13[%c0_44, %c0_45] : memref<16x24xf32, #tpu.memory_space<vmem>>, vector<16x24xf32>
    %c0_46 = arith.constant 0 : index
    %c0_47 = arith.constant 0 : index
    %124 = vector.load %arg14[%c0_46, %c0_47] : memref<16x1xf32, #tpu.memory_space<vmem>>, vector<16x1xf32>
    %c0_48 = arith.constant 0 : index
    %c0_49 = arith.constant 0 : index
    %125 = vector.load %arg15[%c0_48, %c0_49] : memref<16x16xf32, #tpu.memory_space<vmem>>, vector<16x16xf32>
    %c0_50 = arith.constant 0 : index
    %c0_51 = arith.constant 0 : index
    %126 = vector.load %arg16[%c0_50, %c0_51] : memref<16x16xf32, #tpu.memory_space<vmem>>, vector<16x16xf32>
    %cst_52 = arith.constant 0.000000e+00 : f32
    %127 = vector.broadcast %cst_52 : f32 to vector<8x1xf32>
    %128 = tpu.concatenate %127, %83, %127 in 1 : vector<8x1xf32>, vector<8x64xf32>, vector<8x1xf32> -> vector<8x66xf32>
    %129 = vector.extract_strided_slice %128 {offsets = [0, 0], sizes = [8, 64], strides = [1, 1]} : vector<8x66xf32> to vector<8x64xf32>
    %130 = vector.extract_strided_slice %2 {offsets = [3, 0], sizes = [1, 64], strides = [1, 1]} : vector<9x64xf32> to vector<1x64xf32>
    %131 = vector.broadcast %130 : vector<1x64xf32> to vector<8x64xf32>
    %132 = arith.mulf %129, %131 : vector<8x64xf32>
    %133 = vector.extract_strided_slice %128 {offsets = [0, 1], sizes = [8, 64], strides = [1, 1]} : vector<8x66xf32> to vector<8x64xf32>
    %134 = vector.extract_strided_slice %128 {offsets = [0, 2], sizes = [8, 64], strides = [1, 1]} : vector<8x66xf32> to vector<8x64xf32>
    %135 = vector.extract_strided_slice %2 {offsets = [5, 0], sizes = [1, 64], strides = [1, 1]} : vector<9x64xf32> to vector<1x64xf32>
    %136 = vector.broadcast %135 : vector<1x64xf32> to vector<8x64xf32>
    %137 = arith.mulf %134, %136 : vector<8x64xf32>
    %138 = tpu.concatenate %132, %133, %137 in 0 : vector<8x64xf32>, vector<8x64xf32>, vector<8x64xf32> -> vector<24x64xf32>
    %cst_53 = arith.constant dense<0.000000e+00> : vector<16x64xf32>
    %139 = tpu.matmul %123, %138, %cst_53 {dimension_numbers = #tpu.dot_dimension_numbers<[1], [0], [0], [1], [0, 0, 1, 1], [], []>} : vector<16x24xf32>, vector<24x64xf32>, vector<16x64xf32> -> vector<16x64xf32>
    %140 = vector.broadcast %124 : vector<16x1xf32> to vector<16x64xf32>
    %141 = arith.addf %139, %140 : vector<16x64xf32>
    %cst_54 = arith.constant dense<0.000000e+00> : vector<64xf32>
    %142 = vector.multi_reduction <add>, %141, %cst_54 [0] : vector<16x64xf32> to vector<64xf32>
    %143 = vector.shape_cast %142 : vector<64xf32> to vector<1x64xf32>
    %144 = arith.mulf %141, %141 : vector<16x64xf32>
    %cst_55 = arith.constant dense<0.000000e+00> : vector<64xf32>
    %145 = vector.multi_reduction <add>, %144, %cst_55 [0] : vector<16x64xf32> to vector<64xf32>
    %146 = vector.shape_cast %145 : vector<64xf32> to vector<1x64xf32>
    %147 = tpu.concatenate %143, %146 in 0 : vector<1x64xf32>, vector<1x64xf32> -> vector<2x64xf32>
    %cst_56 = arith.constant dense<0.000000e+00> : vector<2x4xf32>
    %148 = tpu.matmul %147, %0, %cst_56 {dimension_numbers = #tpu.dot_dimension_numbers<[1], [0], [0], [1], [0, 0, 1, 1], [], []>} : vector<2x64xf32>, vector<64x4xf32>, vector<2x4xf32> -> vector<2x4xf32>
    %149 = vector.extract_strided_slice %148 {offsets = [0, 0], sizes = [1, 4], strides = [1, 1]} : vector<2x4xf32> to vector<1x4xf32>
    %cst_57 = arith.constant 3.906250e-03 : f32
    %150 = vector.broadcast %cst_57 : f32 to vector<1x4xf32>
    %151 = arith.mulf %149, %150 : vector<1x4xf32>
    %152 = vector.extract_strided_slice %148 {offsets = [1, 0], sizes = [1, 4], strides = [1, 1]} : vector<2x4xf32> to vector<1x4xf32>
    %cst_58 = arith.constant 3.906250e-03 : f32
    %153 = vector.broadcast %cst_58 : f32 to vector<1x4xf32>
    %154 = arith.mulf %152, %153 : vector<1x4xf32>
    %155 = arith.mulf %151, %151 : vector<1x4xf32>
    %156 = arith.subf %154, %155 : vector<1x4xf32>
    %cst_59 = arith.constant 0.000000e+00 : f32
    %157 = vector.broadcast %cst_59 : f32 to vector<1x4xf32>
    %158 = arith.maximumf %156, %157 : vector<1x4xf32>
    %cst_60 = arith.constant 9.99999974E-6 : f32
    %159 = vector.broadcast %cst_60 : f32 to vector<1x4xf32>
    %160 = arith.addf %158, %159 : vector<1x4xf32>
    %161 = math.rsqrt %160 : vector<1x4xf32>
    %162 = tpu.concatenate %151, %161 in 0 : vector<1x4xf32>, vector<1x4xf32> -> vector<2x4xf32>
    %cst_61 = arith.constant dense<0.000000e+00> : vector<2x64xf32>
    %163 = tpu.matmul %162, %1, %cst_61 {dimension_numbers = #tpu.dot_dimension_numbers<[1], [0], [0], [1], [0, 0, 1, 1], [], []>} : vector<2x4xf32>, vector<4x64xf32>, vector<2x64xf32> -> vector<2x64xf32>
    %164 = tpu.concatenate %125, %125, %125, %125 in 1 : vector<16x16xf32>, vector<16x16xf32>, vector<16x16xf32>, vector<16x16xf32> -> vector<16x64xf32>
    %165 = tpu.concatenate %126, %126, %126, %126 in 1 : vector<16x16xf32>, vector<16x16xf32>, vector<16x16xf32>, vector<16x16xf32> -> vector<16x64xf32>
    %166 = vector.extract_strided_slice %163 {offsets = [0, 0], sizes = [1, 64], strides = [1, 1]} : vector<2x64xf32> to vector<1x64xf32>
    %167 = vector.broadcast %166 : vector<1x64xf32> to vector<16x64xf32>
    %168 = arith.subf %141, %167 : vector<16x64xf32>
    %169 = vector.extract_strided_slice %163 {offsets = [1, 0], sizes = [1, 64], strides = [1, 1]} : vector<2x64xf32> to vector<1x64xf32>
    %170 = vector.broadcast %169 : vector<1x64xf32> to vector<16x64xf32>
    %171 = arith.mulf %168, %170 : vector<16x64xf32>
    %172 = arith.mulf %171, %164 : vector<16x64xf32>
    %173 = arith.addf %172, %165 : vector<16x64xf32>
    %cst_62 = arith.constant 0.000000e+00 : f32
    %174 = vector.broadcast %cst_62 : f32 to vector<16x64xf32>
    %175 = arith.maximumf %173, %174 : vector<16x64xf32>
    %c0_63 = arith.constant 0 : index
    %c0_64 = arith.constant 0 : index
    %176 = vector.load %arg17[%c0_63, %c0_64] : memref<16x48xf32, #tpu.memory_space<vmem>>, vector<16x48xf32>
    %c0_65 = arith.constant 0 : index
    %c0_66 = arith.constant 0 : index
    %177 = vector.load %arg18[%c0_65, %c0_66] : memref<16x1xf32, #tpu.memory_space<vmem>>, vector<16x1xf32>
    %c0_67 = arith.constant 0 : index
    %c0_68 = arith.constant 0 : index
    %178 = vector.load %arg19[%c0_67, %c0_68] : memref<16x16xf32, #tpu.memory_space<vmem>>, vector<16x16xf32>
    %c0_69 = arith.constant 0 : index
    %c0_70 = arith.constant 0 : index
    %179 = vector.load %arg20[%c0_69, %c0_70] : memref<16x16xf32, #tpu.memory_space<vmem>>, vector<16x16xf32>
    %cst_71 = arith.constant 0.000000e+00 : f32
    %180 = vector.broadcast %cst_71 : f32 to vector<16x1xf32>
    %181 = tpu.concatenate %180, %175, %180 in 1 : vector<16x1xf32>, vector<16x64xf32>, vector<16x1xf32> -> vector<16x66xf32>
    %182 = vector.extract_strided_slice %181 {offsets = [0, 0], sizes = [16, 64], strides = [1, 1]} : vector<16x66xf32> to vector<16x64xf32>
    %183 = vector.extract_strided_slice %2 {offsets = [3, 0], sizes = [1, 64], strides = [1, 1]} : vector<9x64xf32> to vector<1x64xf32>
    %184 = vector.broadcast %183 : vector<1x64xf32> to vector<16x64xf32>
    %185 = arith.mulf %182, %184 : vector<16x64xf32>
    %186 = vector.extract_strided_slice %181 {offsets = [0, 1], sizes = [16, 64], strides = [1, 1]} : vector<16x66xf32> to vector<16x64xf32>
    %187 = vector.extract_strided_slice %181 {offsets = [0, 2], sizes = [16, 64], strides = [1, 1]} : vector<16x66xf32> to vector<16x64xf32>
    %188 = vector.extract_strided_slice %2 {offsets = [5, 0], sizes = [1, 64], strides = [1, 1]} : vector<9x64xf32> to vector<1x64xf32>
    %189 = vector.broadcast %188 : vector<1x64xf32> to vector<16x64xf32>
    %190 = arith.mulf %187, %189 : vector<16x64xf32>
    %191 = tpu.concatenate %185, %186, %190 in 0 : vector<16x64xf32>, vector<16x64xf32>, vector<16x64xf32> -> vector<48x64xf32>
    %cst_72 = arith.constant dense<0.000000e+00> : vector<16x64xf32>
    %192 = tpu.matmul %176, %191, %cst_72 {dimension_numbers = #tpu.dot_dimension_numbers<[1], [0], [0], [1], [0, 0, 1, 1], [], []>} : vector<16x48xf32>, vector<48x64xf32>, vector<16x64xf32> -> vector<16x64xf32>
    %193 = vector.broadcast %177 : vector<16x1xf32> to vector<16x64xf32>
    %194 = arith.addf %192, %193 : vector<16x64xf32>
    %cst_73 = arith.constant dense<0.000000e+00> : vector<64xf32>
    %195 = vector.multi_reduction <add>, %194, %cst_73 [0] : vector<16x64xf32> to vector<64xf32>
    %196 = vector.shape_cast %195 : vector<64xf32> to vector<1x64xf32>
    %197 = arith.mulf %194, %194 : vector<16x64xf32>
    %cst_74 = arith.constant dense<0.000000e+00> : vector<64xf32>
    %198 = vector.multi_reduction <add>, %197, %cst_74 [0] : vector<16x64xf32> to vector<64xf32>
    %199 = vector.shape_cast %198 : vector<64xf32> to vector<1x64xf32>
    %200 = tpu.concatenate %196, %199 in 0 : vector<1x64xf32>, vector<1x64xf32> -> vector<2x64xf32>
    %cst_75 = arith.constant dense<0.000000e+00> : vector<2x4xf32>
    %201 = tpu.matmul %200, %0, %cst_75 {dimension_numbers = #tpu.dot_dimension_numbers<[1], [0], [0], [1], [0, 0, 1, 1], [], []>} : vector<2x64xf32>, vector<64x4xf32>, vector<2x4xf32> -> vector<2x4xf32>
    %202 = vector.extract_strided_slice %201 {offsets = [0, 0], sizes = [1, 4], strides = [1, 1]} : vector<2x4xf32> to vector<1x4xf32>
    %cst_76 = arith.constant 3.906250e-03 : f32
    %203 = vector.broadcast %cst_76 : f32 to vector<1x4xf32>
    %204 = arith.mulf %202, %203 : vector<1x4xf32>
    %205 = vector.extract_strided_slice %201 {offsets = [1, 0], sizes = [1, 4], strides = [1, 1]} : vector<2x4xf32> to vector<1x4xf32>
    %cst_77 = arith.constant 3.906250e-03 : f32
    %206 = vector.broadcast %cst_77 : f32 to vector<1x4xf32>
    %207 = arith.mulf %205, %206 : vector<1x4xf32>
    %208 = arith.mulf %204, %204 : vector<1x4xf32>
    %209 = arith.subf %207, %208 : vector<1x4xf32>
    %cst_78 = arith.constant 0.000000e+00 : f32
    %210 = vector.broadcast %cst_78 : f32 to vector<1x4xf32>
    %211 = arith.maximumf %209, %210 : vector<1x4xf32>
    %cst_79 = arith.constant 9.99999974E-6 : f32
    %212 = vector.broadcast %cst_79 : f32 to vector<1x4xf32>
    %213 = arith.addf %211, %212 : vector<1x4xf32>
    %214 = math.rsqrt %213 : vector<1x4xf32>
    %215 = tpu.concatenate %204, %214 in 0 : vector<1x4xf32>, vector<1x4xf32> -> vector<2x4xf32>
    %cst_80 = arith.constant dense<0.000000e+00> : vector<2x64xf32>
    %216 = tpu.matmul %215, %1, %cst_80 {dimension_numbers = #tpu.dot_dimension_numbers<[1], [0], [0], [1], [0, 0, 1, 1], [], []>} : vector<2x4xf32>, vector<4x64xf32>, vector<2x64xf32> -> vector<2x64xf32>
    %217 = tpu.concatenate %178, %178, %178, %178 in 1 : vector<16x16xf32>, vector<16x16xf32>, vector<16x16xf32>, vector<16x16xf32> -> vector<16x64xf32>
    %218 = tpu.concatenate %179, %179, %179, %179 in 1 : vector<16x16xf32>, vector<16x16xf32>, vector<16x16xf32>, vector<16x16xf32> -> vector<16x64xf32>
    %219 = vector.extract_strided_slice %216 {offsets = [0, 0], sizes = [1, 64], strides = [1, 1]} : vector<2x64xf32> to vector<1x64xf32>
    %220 = vector.broadcast %219 : vector<1x64xf32> to vector<16x64xf32>
    %221 = arith.subf %194, %220 : vector<16x64xf32>
    %222 = vector.extract_strided_slice %216 {offsets = [1, 0], sizes = [1, 64], strides = [1, 1]} : vector<2x64xf32> to vector<1x64xf32>
    %223 = vector.broadcast %222 : vector<1x64xf32> to vector<16x64xf32>
    %224 = arith.mulf %221, %223 : vector<16x64xf32>
    %225 = arith.mulf %224, %217 : vector<16x64xf32>
    %226 = arith.addf %225, %218 : vector<16x64xf32>
    %cst_81 = arith.constant 0.000000e+00 : f32
    %227 = vector.broadcast %cst_81 : f32 to vector<16x64xf32>
    %228 = arith.maximumf %226, %227 : vector<16x64xf32>
    %c0_82 = arith.constant 0 : index
    %c0_83 = arith.constant 0 : index
    %229 = vector.load %arg21[%c0_82, %c0_83] : memref<16x48xf32, #tpu.memory_space<vmem>>, vector<16x48xf32>
    %c0_84 = arith.constant 0 : index
    %c0_85 = arith.constant 0 : index
    %230 = vector.load %arg22[%c0_84, %c0_85] : memref<16x1xf32, #tpu.memory_space<vmem>>, vector<16x1xf32>
    %c0_86 = arith.constant 0 : index
    %c0_87 = arith.constant 0 : index
    %231 = vector.load %arg23[%c0_86, %c0_87] : memref<16x16xf32, #tpu.memory_space<vmem>>, vector<16x16xf32>
    %c0_88 = arith.constant 0 : index
    %c0_89 = arith.constant 0 : index
    %232 = vector.load %arg24[%c0_88, %c0_89] : memref<16x16xf32, #tpu.memory_space<vmem>>, vector<16x16xf32>
    %cst_90 = arith.constant 0.000000e+00 : f32
    %233 = vector.broadcast %cst_90 : f32 to vector<16x1xf32>
    %234 = tpu.concatenate %233, %228, %233 in 1 : vector<16x1xf32>, vector<16x64xf32>, vector<16x1xf32> -> vector<16x66xf32>
    %235 = vector.extract_strided_slice %234 {offsets = [0, 0], sizes = [16, 64], strides = [1, 1]} : vector<16x66xf32> to vector<16x64xf32>
    %236 = vector.extract_strided_slice %2 {offsets = [3, 0], sizes = [1, 64], strides = [1, 1]} : vector<9x64xf32> to vector<1x64xf32>
    %237 = vector.broadcast %236 : vector<1x64xf32> to vector<16x64xf32>
    %238 = arith.mulf %235, %237 : vector<16x64xf32>
    %239 = vector.extract_strided_slice %234 {offsets = [0, 1], sizes = [16, 64], strides = [1, 1]} : vector<16x66xf32> to vector<16x64xf32>
    %240 = vector.extract_strided_slice %234 {offsets = [0, 2], sizes = [16, 64], strides = [1, 1]} : vector<16x66xf32> to vector<16x64xf32>
    %241 = vector.extract_strided_slice %2 {offsets = [5, 0], sizes = [1, 64], strides = [1, 1]} : vector<9x64xf32> to vector<1x64xf32>
    %242 = vector.broadcast %241 : vector<1x64xf32> to vector<16x64xf32>
    %243 = arith.mulf %240, %242 : vector<16x64xf32>
    %244 = tpu.concatenate %238, %239, %243 in 0 : vector<16x64xf32>, vector<16x64xf32>, vector<16x64xf32> -> vector<48x64xf32>
    %cst_91 = arith.constant dense<0.000000e+00> : vector<16x64xf32>
    %245 = tpu.matmul %229, %244, %cst_91 {dimension_numbers = #tpu.dot_dimension_numbers<[1], [0], [0], [1], [0, 0, 1, 1], [], []>} : vector<16x48xf32>, vector<48x64xf32>, vector<16x64xf32> -> vector<16x64xf32>
    %246 = vector.broadcast %230 : vector<16x1xf32> to vector<16x64xf32>
    %247 = arith.addf %245, %246 : vector<16x64xf32>
    %cst_92 = arith.constant dense<0.000000e+00> : vector<64xf32>
    %248 = vector.multi_reduction <add>, %247, %cst_92 [0] : vector<16x64xf32> to vector<64xf32>
    %249 = vector.shape_cast %248 : vector<64xf32> to vector<1x64xf32>
    %250 = arith.mulf %247, %247 : vector<16x64xf32>
    %cst_93 = arith.constant dense<0.000000e+00> : vector<64xf32>
    %251 = vector.multi_reduction <add>, %250, %cst_93 [0] : vector<16x64xf32> to vector<64xf32>
    %252 = vector.shape_cast %251 : vector<64xf32> to vector<1x64xf32>
    %253 = tpu.concatenate %249, %252 in 0 : vector<1x64xf32>, vector<1x64xf32> -> vector<2x64xf32>
    %cst_94 = arith.constant dense<0.000000e+00> : vector<2x4xf32>
    %254 = tpu.matmul %253, %0, %cst_94 {dimension_numbers = #tpu.dot_dimension_numbers<[1], [0], [0], [1], [0, 0, 1, 1], [], []>} : vector<2x64xf32>, vector<64x4xf32>, vector<2x4xf32> -> vector<2x4xf32>
    %255 = vector.extract_strided_slice %254 {offsets = [0, 0], sizes = [1, 4], strides = [1, 1]} : vector<2x4xf32> to vector<1x4xf32>
    %cst_95 = arith.constant 3.906250e-03 : f32
    %256 = vector.broadcast %cst_95 : f32 to vector<1x4xf32>
    %257 = arith.mulf %255, %256 : vector<1x4xf32>
    %258 = vector.extract_strided_slice %254 {offsets = [1, 0], sizes = [1, 4], strides = [1, 1]} : vector<2x4xf32> to vector<1x4xf32>
    %cst_96 = arith.constant 3.906250e-03 : f32
    %259 = vector.broadcast %cst_96 : f32 to vector<1x4xf32>
    %260 = arith.mulf %258, %259 : vector<1x4xf32>
    %261 = arith.mulf %257, %257 : vector<1x4xf32>
    %262 = arith.subf %260, %261 : vector<1x4xf32>
    %cst_97 = arith.constant 0.000000e+00 : f32
    %263 = vector.broadcast %cst_97 : f32 to vector<1x4xf32>
    %264 = arith.maximumf %262, %263 : vector<1x4xf32>
    %cst_98 = arith.constant 9.99999974E-6 : f32
    %265 = vector.broadcast %cst_98 : f32 to vector<1x4xf32>
    %266 = arith.addf %264, %265 : vector<1x4xf32>
    %267 = math.rsqrt %266 : vector<1x4xf32>
    %268 = tpu.concatenate %257, %267 in 0 : vector<1x4xf32>, vector<1x4xf32> -> vector<2x4xf32>
    %cst_99 = arith.constant dense<0.000000e+00> : vector<2x64xf32>
    %269 = tpu.matmul %268, %1, %cst_99 {dimension_numbers = #tpu.dot_dimension_numbers<[1], [0], [0], [1], [0, 0, 1, 1], [], []>} : vector<2x4xf32>, vector<4x64xf32>, vector<2x64xf32> -> vector<2x64xf32>
    %270 = tpu.concatenate %231, %231, %231, %231 in 1 : vector<16x16xf32>, vector<16x16xf32>, vector<16x16xf32>, vector<16x16xf32> -> vector<16x64xf32>
    %271 = tpu.concatenate %232, %232, %232, %232 in 1 : vector<16x16xf32>, vector<16x16xf32>, vector<16x16xf32>, vector<16x16xf32> -> vector<16x64xf32>
    %272 = vector.extract_strided_slice %269 {offsets = [0, 0], sizes = [1, 64], strides = [1, 1]} : vector<2x64xf32> to vector<1x64xf32>
    %273 = vector.broadcast %272 : vector<1x64xf32> to vector<16x64xf32>
    %274 = arith.subf %247, %273 : vector<16x64xf32>
    %275 = vector.extract_strided_slice %269 {offsets = [1, 0], sizes = [1, 64], strides = [1, 1]} : vector<2x64xf32> to vector<1x64xf32>
    %276 = vector.broadcast %275 : vector<1x64xf32> to vector<16x64xf32>
    %277 = arith.mulf %274, %276 : vector<16x64xf32>
    %278 = arith.mulf %277, %270 : vector<16x64xf32>
    %279 = arith.addf %278, %271 : vector<16x64xf32>
    %cst_100 = arith.constant 0.000000e+00 : f32
    %280 = vector.broadcast %cst_100 : f32 to vector<16x64xf32>
    %281 = arith.maximumf %279, %280 : vector<16x64xf32>
    %282 = arith.addf %122, %281 : vector<16x64xf32>
    %cst_101 = arith.constant 0.000000e+00 : f32
    %283 = vector.broadcast %cst_101 : f32 to vector<16x64xf32>
    %284 = arith.maximumf %282, %283 : vector<16x64xf32>
    %c0_102 = arith.constant 0 : index
    %c0_103 = arith.constant 0 : index
    %285 = vector.load %arg25[%c0_102, %c0_103] : memref<10x16xf32, #tpu.memory_space<vmem>>, vector<10x16xf32>
    %c0_104 = arith.constant 0 : index
    %c0_105 = arith.constant 0 : index
    %286 = vector.load %arg26[%c0_104, %c0_105] : memref<10x1xf32, #tpu.memory_space<vmem>>, vector<10x1xf32>
    %c0_106 = arith.constant 0 : index
    %c0_107 = arith.constant 0 : index
    %287 = vector.load %arg27[%c0_106, %c0_107] : memref<1x10xf32, #tpu.memory_space<vmem>>, vector<1x10xf32>
    %c0_108 = arith.constant 0 : index
    %c0_109 = arith.constant 0 : index
    %288 = vector.load %arg28[%c0_108, %c0_109] : memref<1x1xf32, #tpu.memory_space<vmem>>, vector<1x1xf32>
    %cst_110 = arith.constant dense<0.000000e+00> : vector<16x4xf32>
    %289 = tpu.matmul %284, %0, %cst_110 {dimension_numbers = #tpu.dot_dimension_numbers<[1], [0], [0], [1], [0, 0, 1, 1], [], []>} : vector<16x64xf32>, vector<64x4xf32>, vector<16x4xf32> -> vector<16x4xf32>
    %cst_111 = arith.constant 6.250000e-02 : f32
    %290 = vector.broadcast %cst_111 : f32 to vector<16x4xf32>
    %291 = arith.mulf %289, %290 : vector<16x4xf32>
    %cst_112 = arith.constant dense<0.000000e+00> : vector<10x4xf32>
    %292 = tpu.matmul %285, %291, %cst_112 {dimension_numbers = #tpu.dot_dimension_numbers<[1], [0], [0], [1], [0, 0, 1, 1], [], []>} : vector<10x16xf32>, vector<16x4xf32>, vector<10x4xf32> -> vector<10x4xf32>
    %293 = vector.broadcast %286 : vector<10x1xf32> to vector<10x4xf32>
    %294 = arith.addf %292, %293 : vector<10x4xf32>
    %cst_113 = arith.constant 0.000000e+00 : f32
    %295 = vector.broadcast %cst_113 : f32 to vector<10x4xf32>
    %296 = arith.maximumf %294, %295 : vector<10x4xf32>
    %cst_114 = arith.constant dense<0.000000e+00> : vector<1x4xf32>
    %297 = tpu.matmul %287, %296, %cst_114 {dimension_numbers = #tpu.dot_dimension_numbers<[1], [0], [0], [1], [0, 0, 1, 1], [], []>} : vector<1x10xf32>, vector<10x4xf32>, vector<1x4xf32> -> vector<1x4xf32>
    %298 = vector.broadcast %288 : vector<1x1xf32> to vector<1x4xf32>
    %299 = arith.addf %297, %298 : vector<1x4xf32>
    %c0_115 = arith.constant 0 : index
    %c0_116 = arith.constant 0 : index
    %c0_117 = arith.constant 0 : index
    %300 = vector.load %arg29[%c0_115, %c0_116, %c0_117] : memref<1x1x4xf32, #tpu.memory_space<vmem>>, vector<1x1x4xf32>
    %301 = vector.shape_cast %300 : vector<1x1x4xf32> to vector<1x4xf32>
    %302 = vector.shape_cast %299 : vector<1x4xf32> to vector<1x1x4xf32>
    tpu.vector_store %arg29[%c0_115, %c0_116, %c0_117], %302 {strides = array<i32>} : memref<1x1x4xf32, #tpu.memory_space<vmem>>, vector<1x1x4xf32>,
    return
  }
  func.func @transform_0(%arg0: i32) -> (i32, i32, i32) {
    %c0_i32 = arith.constant 0 : i32
    %c0_i32_0 = arith.constant 0 : i32
    %c0_i32_1 = arith.constant 0 : i32
    return %arg0, %c0_i32, %c0_i32_0 : i32, i32, i32
  }
  func.func @transform_1(%arg0: i32) -> (i32, i32) {
    %c0_i32 = arith.constant 0 : i32
    %c0_i32_0 = arith.constant 0 : i32
    %c0_i32_1 = arith.constant 0 : i32
    return %c0_i32, %c0_i32_0 : i32, i32
  }
  func.func @transform_2(%arg0: i32) -> (i32, i32) {
    %c0_i32 = arith.constant 0 : i32
    %c0_i32_0 = arith.constant 0 : i32
    %c0_i32_1 = arith.constant 0 : i32
    return %c0_i32, %c0_i32_0 : i32, i32
  }
  func.func @transform_3(%arg0: i32) -> (i32, i32) {
    %c0_i32 = arith.constant 0 : i32
    %c0_i32_0 = arith.constant 0 : i32
    %c0_i32_1 = arith.constant 0 : i32
    return %c0_i32, %c0_i32_0 : i32, i32
  }
  func.func @transform_4(%arg0: i32) -> (i32, i32) {
    %c0_i32 = arith.constant 0 : i32
    %c0_i32_0 = arith.constant 0 : i32
    %c0_i32_1 = arith.constant 0 : i32
    return %c0_i32, %c0_i32_0 : i32, i32
  }
  func.func @transform_5(%arg0: i32) -> (i32, i32) {
    %c0_i32 = arith.constant 0 : i32
    %c0_i32_0 = arith.constant 0 : i32
    %c0_i32_1 = arith.constant 0 : i32
    return %c0_i32, %c0_i32_0 : i32, i32
  }
  func.func @transform_6(%arg0: i32) -> (i32, i32) {
    %c0_i32 = arith.constant 0 : i32
    %c0_i32_0 = arith.constant 0 : i32
    %c0_i32_1 = arith.constant 0 : i32
    return %c0_i32, %c0_i32_0 : i32, i32
  }
  func.func @transform_7(%arg0: i32) -> (i32, i32) {
    %c0_i32 = arith.constant 0 : i32
    %c0_i32_0 = arith.constant 0 : i32
    %c0_i32_1 = arith.constant 0 : i32
    return %c0_i32, %c0_i32_0 : i32, i32
  }
  func.func @transform_8(%arg0: i32) -> (i32, i32) {
    %c0_i32 = arith.constant 0 : i32
    %c0_i32_0 = arith.constant 0 : i32
    %c0_i32_1 = arith.constant 0 : i32
    return %c0_i32, %c0_i32_0 : i32, i32
  }
  func.func @transform_9(%arg0: i32) -> (i32, i32) {
    %c0_i32 = arith.constant 0 : i32
    %c0_i32_0 = arith.constant 0 : i32
    %c0_i32_1 = arith.constant 0 : i32
    return %c0_i32, %c0_i32_0 : i32, i32
  }
  func.func @transform_10(%arg0: i32) -> (i32, i32) {
    %c0_i32 = arith.constant 0 : i32
    %c0_i32_0 = arith.constant 0 : i32
    %c0_i32_1 = arith.constant 0 : i32
    return %c0_i32, %c0_i32_0 : i32, i32
  }
  func.func @transform_11(%arg0: i32) -> (i32, i32) {
    %c0_i32 = arith.constant 0 : i32
    %c0_i32_0 = arith.constant 0 : i32
    %c0_i32_1 = arith.constant 0 : i32
    return %c0_i32, %c0_i32_0 : i32, i32
  }
  func.func @transform_12(%arg0: i32) -> (i32, i32) {
    %c0_i32 = arith.constant 0 : i32
    %c0_i32_0 = arith.constant 0 : i32
    %c0_i32_1 = arith.constant 0 : i32
    return %c0_i32, %c0_i32_0 : i32, i32
  }
  func.func @transform_13(%arg0: i32) -> (i32, i32) {
    %c0_i32 = arith.constant 0 : i32
    %c0_i32_0 = arith.constant 0 : i32
    %c0_i32_1 = arith.constant 0 : i32
    return %c0_i32, %c0_i32_0 : i32, i32
  }
  func.func @transform_14(%arg0: i32) -> (i32, i32) {
    %c0_i32 = arith.constant 0 : i32
    %c0_i32_0 = arith.constant 0 : i32
    %c0_i32_1 = arith.constant 0 : i32
    return %c0_i32, %c0_i32_0 : i32, i32
  }
  func.func @transform_15(%arg0: i32) -> (i32, i32) {
    %c0_i32 = arith.constant 0 : i32
    %c0_i32_0 = arith.constant 0 : i32
    %c0_i32_1 = arith.constant 0 : i32
    return %c0_i32, %c0_i32_0 : i32, i32
  }
  func.func @transform_16(%arg0: i32) -> (i32, i32) {
    %c0_i32 = arith.constant 0 : i32
    %c0_i32_0 = arith.constant 0 : i32
    %c0_i32_1 = arith.constant 0 : i32
    return %c0_i32, %c0_i32_0 : i32, i32
  }
  func.func @transform_17(%arg0: i32) -> (i32, i32) {
    %c0_i32 = arith.constant 0 : i32
    %c0_i32_0 = arith.constant 0 : i32
    %c0_i32_1 = arith.constant 0 : i32
    return %c0_i32, %c0_i32_0 : i32, i32
  }
  func.func @transform_18(%arg0: i32) -> (i32, i32) {
    %c0_i32 = arith.constant 0 : i32
    %c0_i32_0 = arith.constant 0 : i32
    %c0_i32_1 = arith.constant 0 : i32
    return %c0_i32, %c0_i32_0 : i32, i32
  }
  func.func @transform_19(%arg0: i32) -> (i32, i32) {
    %c0_i32 = arith.constant 0 : i32
    %c0_i32_0 = arith.constant 0 : i32
    %c0_i32_1 = arith.constant 0 : i32
    return %c0_i32, %c0_i32_0 : i32, i32
  }
  func.func @transform_20(%arg0: i32) -> (i32, i32) {
    %c0_i32 = arith.constant 0 : i32
    %c0_i32_0 = arith.constant 0 : i32
    %c0_i32_1 = arith.constant 0 : i32
    return %c0_i32, %c0_i32_0 : i32, i32
  }
  func.func @transform_21(%arg0: i32) -> (i32, i32) {
    %c0_i32 = arith.constant 0 : i32
    %c0_i32_0 = arith.constant 0 : i32
    %c0_i32_1 = arith.constant 0 : i32
    return %c0_i32, %c0_i32_0 : i32, i32
  }
  func.func @transform_22(%arg0: i32) -> (i32, i32) {
    %c0_i32 = arith.constant 0 : i32
    %c0_i32_0 = arith.constant 0 : i32
    %c0_i32_1 = arith.constant 0 : i32
    return %c0_i32, %c0_i32_0 : i32, i32
  }
  func.func @transform_23(%arg0: i32) -> (i32, i32) {
    %c0_i32 = arith.constant 0 : i32
    %c0_i32_0 = arith.constant 0 : i32
    %c0_i32_1 = arith.constant 0 : i32
    return %c0_i32, %c0_i32_0 : i32, i32
  }
  func.func @transform_24(%arg0: i32) -> (i32, i32) {
    %c0_i32 = arith.constant 0 : i32
    %c0_i32_0 = arith.constant 0 : i32
    %c0_i32_1 = arith.constant 0 : i32
    return %c0_i32, %c0_i32_0 : i32, i32
  }
  func.func @transform_25(%arg0: i32) -> (i32, i32) {
    %c0_i32 = arith.constant 0 : i32
    %c0_i32_0 = arith.constant 0 : i32
    %c0_i32_1 = arith.constant 0 : i32
    return %c0_i32, %c0_i32_0 : i32, i32
  }
  func.func @transform_26(%arg0: i32) -> (i32, i32) {
    %c0_i32 = arith.constant 0 : i32
    %c0_i32_0 = arith.constant 0 : i32
    %c0_i32_1 = arith.constant 0 : i32
    return %c0_i32, %c0_i32_0 : i32, i32
  }
  func.func @transform_27(%arg0: i32) -> (i32, i32) {
    %c0_i32 = arith.constant 0 : i32
    %c0_i32_0 = arith.constant 0 : i32
    %c0_i32_1 = arith.constant 0 : i32
    return %c0_i32, %c0_i32_0 : i32, i32
  }
  func.func @transform_28(%arg0: i32) -> (i32, i32, i32) {
    %c0_i32 = arith.constant 0 : i32
    %c0_i32_0 = arith.constant 0 : i32
    %c0_i32_1 = arith.constant 0 : i32
    return %arg0, %c0_i32, %c0_i32_0 : i32, i32, i32
  }
}

</mosaic_0001>

<bundles_post_ra>
// kernel: mae_alpha_classifier.1
= control target key start
LH: loop header
LB: loop body
LE: loop exit
PB: predicated region body
PF: predicated region fallthrough
CT: control target
= control target key end

     0   :  { %s4346_s0 = inlined_call_operand.vmem [shape: f32[2,4,64], index: 0, kind: input, shape index: {}]   ;;  %s4347_s1 = inlined_call_operand.vmem [shape: f32[64,4], index: 1, kind: input, shape index: {}]   ;;  %s4348_s2 = inlined_call_operand.vmem [shape: f32[4,64], index: 2, kind: input, shape index: {}]   ;;  %s4349_s3 = inlined_call_operand.vmem [shape: f32[9,64], index: 3, kind: input, shape index: {}]   ;;  %s4350_s4 = inlined_call_operand.vmem [shape: f32[8,72], index: 4, kind: input, shape index: {}]   ;;  %s4351_s5 = inlined_call_operand.vmem [shape: f32[8,1], index: 5, kind: input, shape index: {}]   ;;  %s4352_s6 = inlined_call_operand.vmem [shape: f32[8,16], index: 6, kind: input, shape index: {}]   ;;  %s4353_s7 = inlined_call_operand.vmem [shape: f32[8,16], index: 7, kind: input, shape index: {}]   ;;  %s4354_s8 = inlined_call_operand.vmem [shape: f32[16,8], index: 8, kind: input, shape index: {}]   ;;  %s4355_s9 = inlined_call_operand.vmem [shape: f32[16,1], index: 9, kind: input, shape index: {}]   ;;  %s4356_s10 = inlined_call_operand.vmem [shape: f32[16,16], index: 10, kind: input, shape index: {}]   ;;  %s4357_s11 = inlined_call_operand.vmem [shape: f32[16,16], index: 11, kind: input, shape index: {}]   ;;  %s4358_s12 = inlined_call_operand.vmem [shape: f32[16,24], index: 12, kind: input, shape index: {}]   ;;  %s4359_s13 = inlined_call_operand.vmem [shape: f32[16,1], index: 13, kind: input, shape index: {}]   ;;  %s4360_s14 = inlined_call_operand.vmem [shape: f32[16,16], index: 14, kind: input, shape index: {}]   ;;  %s4361_s15 = inlined_call_operand.vmem [shape: f32[16,16], index: 15, kind: input, shape index: {}]   ;;  %s4362_s16 = inlined_call_operand.vmem [shape: f32[16,48], index: 16, kind: input, shape index: {}]   ;;  %s4363_s17 = inlined_call_operand.vmem [shape: f32[16,1], index: 17, kind: input, shape index: {}]   ;;  %s4364_s18 = inlined_call_operand.vmem [shape: f32[16,16], index: 18, kind: input, shape index: {}]   ;;  %s4365_s19 = inlined_call_operand.vmem [shape: f32[16,16], index: 19, kind: input, shape index: {}]   ;;  %s4366_s20 = inlined_call_operand.vmem [shape: f32[16,48], index: 20, kind: input, shape index: {}]   ;;  %s4367_s21 = inlined_call_operand.vmem [shape: f32[16,1], index: 21, kind: input, shape index: {}]   ;;  %s4368_s22 = inlined_call_operand.vmem [shape: f32[16,16], index: 22, kind: input, shape index: {}]   ;;  %s4369_s23 = inlined_call_operand.vmem [shape: f32[16,16], index: 23, kind: input, shape index: {}]   ;;  %s4370_s24 = inlined_call_operand.vmem [shape: f32[10,16], index: 24, kind: input, shape index: {}]   ;;  %s4371_s25 = inlined_call_operand.vmem [shape: f32[10,1], index: 25, kind: input, shape index: {}]   ;;  %s4372_s26 = inlined_call_operand.vmem [shape: f32[1,10], index: 26, kind: input, shape index: {}]   ;;  %s4373_s27 = inlined_call_operand.<no memory space> [shape: f32[1,1], index: 27, kind: input, shape index: {}]   ;;  %s4374_s28 = inlined_call_operand.vmem [shape: f32[2,1,4], index: 28, kind: output, shape index: {}]  }
   0x1   :  { %4391 = sst [smem:[#allocation3_spill]] %s4346_s0  ;;  %v33_v0 = vstv %s4373_s27 }
   0x2   :  { %4392 = sst [smem:[#allocation4_spill]] %s4347_s1  ;;  %34 = vst [vmem:[#allocation2] sm:$0x1] %v33_v0 }
   0x3   :  { %4393 = sst [smem:[#allocation5_spill]] %s4348_s2 }
   0x4   :  { %4394 = sst [smem:[#allocation6_spill]] %s4349_s3 }
   0x5   :  { %4395 = sst [smem:[#allocation7_spill]] %s4350_s4 }
   0x6   :  { %4396 = sst [smem:[#allocation8_spill]] %s4351_s5 }
   0x7   :  { %4397 = sst [smem:[#allocation9_spill]] %s4352_s6 }
   0x8   :  { %4398 = sst [smem:[#allocation10_spill]] %s4353_s7 }
   0x9   :  { %4399 = sst [smem:[#allocation11_spill]] %s4354_s8 }
   0xa   :  { %4400 = sst [smem:[#allocation12_spill]] %s4355_s9  ;;  %s3647_s9 = smov 0  }
   0xb   :  { %4401 = sst [smem:[#allocation13_spill]] %s4356_s10 }
   0xc   :  { %4402 = sst [smem:[#allocation14_spill]] %s4357_s11 }
   0xd   :  { %4403 = sst [smem:[#allocation15_spill]] %s4358_s12 }
   0xe LB: > { %s3056_s30 = sadd.s32 4294967295, %s3475_s9   ;;  %p3060_p0 = scmp.ge.s32.totalorder %s3475_s9, 1  ;;  %s3475_s9 = sphi %s3647_s9, %s40_s9  }
   0xf   : > { %p763_p1 = scmp.lt.s32.totalorder %s3475_s9, 3 }
  0x11   : > { %p764_p2 = pnand %p3060_p0, %p763_p1 }
  0x12   : > { %p834_p3 = scmp.lt.s32.totalorder (!%p764_p2), %s3056_s30, 1  ;;  %s4404_s6 = sld [smem:[#allocation6_spill]] (!%p764_p2) }
  0x13   : > { %767 = sbr.rel (%p764_p2) target bundleno = 4373 (0x1115), region = 132  ;;  %s4405_s29 = sld [smem:[#allocation3_spill]] (!%p764_p2) }
  0x14   : > { %s3477_s7 = smov (!%p764_p2), 7   ;;  %s3478_s12 = smov (!%p764_p2), 4  }
  0x15   : > { %s3479_s8 = smov (!%p764_p2), 6   ;;  %s3480_s5 = smov (!%p764_p2), 8  }
  0x16   : > { %s3481_s27 = smov (!%p764_p2), 3   ;;  %s3482_s3 = smov (!%p764_p2), 5  }
  0x17   : > { %s3484_s0 = smov (!%p764_p2), 2   ;;  %s3486_s11 = smov (!%p764_p2), 121  }
  0x18   : > { %v867_v1 = vlaneseq  ;;  %s4421_s30 = smov (!%p834_p3, %s3056_s30), 1  ;;  %v850_v3 = vld [vmem:[%s4404_s6] sm:$0xff]  ;;  %vm857_vm0 = vcmask 1043456   ;;  %v3062_v12 = vld [vmem:[%s4404_s6 + $0x8] ss:$0 sm:$0xff]  ;;  %v3485_v19 = vmov 0.0  }
  0x19   : > { %s3061_s10 = sshll.u32 %s4421_s30, 2  ;;  %3201 = vmatprep.subr.mxu0 %v3485_v19  ;;  %3222 = vmatprep.subr.mxu1 %v3485_v19  ;;  %vm863_vm1 = vcmask 31744   ;;  %vm865_vm2 = vcmask 556032   ;;  %vm3488_vm3 = vmmov 0   ;;  %v3491_v35 = vmov 0   ;;  %s3493_s1 = smov 125  }
  0x1a   : > { %v868_v2 = vshrl.u32 %v867_v1, 7  ;;  %s837_s2 = scalar_lea.vmem %s4405_s29, %s3061_s10  ;;  %s4386_s10 = smov 1   ;;  %3219 = vmatprep.mubr.msk.f32.mxu0 %vm3488_vm3, %v3485_v19  ;;  %3238 = vmatprep.mubr.msk.f32.mxu1 %vm3488_vm3, %v3485_v19  ;;  %vm972_vm4 = vcmask 588800   ;;  %vm1046_vm5 = vcmask 523264   ;;  %vm1062_vm6 = vcmask 1040384  }
  0x1b   : > { %v852_v7 = vld [vmem:[%s837_s2] sm:$0xf]  ;;  %s3487_s29 = smov 120   ;;  %s3489_s2 = smov 122   ;;  %3449 = vset.pattern.permute.xlu0 %v3491_v35  ;;  %3450 = vset.pattern.permute.xlu1 %v3491_v35  ;;  %vm1283_vm7 = vcmask 64512   ;;  %vm1233_vm8 = vcmask 130048  }
  0x1c   : > { %v919_v4 = vsub.s32 7, %v868_v2  ;;  %v910_v5 = vsub.s32 6, %v868_v2  ;;  %v858_v8 = vsel %vm857_vm0, %v852_v7, 0.0  ;;  %v892_v10 = vsub.s32 3, %v868_v2  ;;  %s4382_s4 = smov 127   ;;  %s840_s6 = scalar_lea.vmem %s4374_s28, %s4421_s30 }
  0x1d   : > { %860 = vrot.lane.b32.xlu0 %v858_v8, %s3478_s12  ;;  %v901_v11 = vsub.s32 5, %v868_v2  ;;  %v3672_v15 = vsub.s32 1, %v868_v2  ;;  %v883_v16 = vsub.s32 2, %v868_v2  ;;  %v3681_v20 = vsub.s32 0, %v868_v2  ;;  %s3492_s12 = smov 124  }
  0x1e   : > { %v920_v6 = vrot.slane %v850_v3, %v919_v4  ;;  %v911_v9 = vrot.slane %v850_v3, %v910_v5  ;;  %v3668_v13 = vrot.slane %v850_v3, %v892_v10  ;;  %vm1235_vm9 = vcmask 261120  }
  0x1f   : > { %v3670_v14 = vrot.slane %v850_v3, %v901_v11  ;;  %v875_v17 = vrot.slane %v850_v3, %v3672_v15  ;;  %v884_v18 = vrot.slane %v850_v3, %v883_v16  ;;  %v870_v21 = vrot.slane %v850_v3, %v3681_v20 }
  0x20   : > { %922 = vrot.lane.b32.xlu1 %v920_v6, %s3477_s7  ;;  %s3490_s7 = smov 123   ;;  %vm1237_vm10 = vcmask 392192   ;;  %vm1622_vm11 = vcmask 7168   ;;  %vm1624_vm12 = vcmask 531456   ;;  %vm1649_vm13 = vcmask 195584  }
  0x21   : > { %931 = vrot.lane.b32.xlu0 %v3062_v12, %s3480_s5  ;;  %s4415_s5 = smov 126   ;;  %vm2933_vm14 = vcmask 1041408   ;;  %vm2929_vm15 = vcmask 80896  }
  0x24   : > { %913 = vrot.lane.b32.xlu1 %v911_v9, %s3479_s8  ;;  %s4384_s8 = smov 126  }
  0x25   : > { %904 = vrot.lane.b32.xlu0 %v3670_v14, %s3482_s3  ;;  %s4406_s3 = sld [smem:[#allocation8_spill]] }
  0x28   : > { %895 = vrot.lane.b32.xlu1 %v3668_v13, %s3481_s27  ;;  %s4413_s27 = sld [smem:[#allocation11_spill]] }
  0x29   : > { %886 = vrot.lane.b32.xlu0 %v884_v18, %s3484_s0 }
  0x2b   : > { %v854_v41 = vld [vmem:[%s4406_s3] sm:$0xff]  ;;  %s4409_s3 = sld [smem:[#allocation12_spill]] }
  0x2c   : > { %877 = vrot.lane.b32.xlu1 %v875_v17, %s4386_s10 }
  0x2e   : > { %v1265_v35 = vld [vmem:[%s4413_s27] sm:$0xff] }
  0x31   : > { %v1267_v44 = vld [vmem:[%s4409_s3] sm:$0xff] }
  0x8f   : > { %v861_v23 = vpop.permute.xlu0 %860 }
  0x90   : > { %v864_v24 = vsel %vm863_vm1, 0.0, %v861_v23 }
  0x91   : > { %v866_v25 = vsel %vm865_vm2, %v864_v24, 0.0 }
  0x92   : > { %v923_v22 = vpop.permute.xlu1 %922  ;;  %v3685_v27 = vmul.f32 %v870_v21, %v866_v25 }
  0x93   : > { %v925_v26 = vmul.f32 %v923_v22, %v866_v25  ;;  %v932_v29 = vpop.permute.xlu0 %931 }
  0x94   : > { %v934_v30 = vmul.f32 %v932_v29, %v866_v25 }
  0x95   : > { %960 = vrot.lane.b32.xlu1 %v925_v26, %s3486_s11  ;;  %s3498_s11 = smov 16  }
  0x96   : > { %v914_v28 = vpop.permute.xlu1 %913  ;;  %964 = vrot.lane.b32.xlu0 %v934_v30, %s3487_s29  ;;  %s4410_s29 = sld [smem:[#allocation7_spill]] }
  0x97   : > { %v905_v32 = vpop.permute.xlu0 %904  ;;  %v916_v33 = vmul.f32 %v914_v28, %v866_v25 }
  0x98   : > { %v907_v34 = vmul.f32 %v905_v32, %v866_v25 }
  0x9a   : > { %v896_v31 = vpop.permute.xlu1 %895  ;;  %956 = vrot.lane.b32.xlu0 %v916_v33, %s3489_s2  ;;  %952 = vrot.lane.b32.xlu1 %v907_v34, %s3490_s7  ;;  %s4407_s2 = sld [smem:[#allocation9_spill]]  ;;  %s3496_s7 = smov 48   ;;  %v1268_v34 = vld [vmem:[%s4409_s3 + $0x8] sm:$0xff] }
  0x9b   : > { %v898_v36 = vmul.f32 %v896_v31, %v866_v25  ;;  %v887_v38 = vpop.permute.xlu0 %886  ;;  %s4417_s3 = smov 1  }
  0x9c   : > { %v889_v40 = vmul.f32 %v887_v38, %v866_v25  ;;  %v853_v53 = vld [vmem:[%s4410_s29] sm:$0xff]  ;;  %s4414_s29 = smov 127  }
  0x9e   : > { %v878_v37 = vpop.permute.xlu1 %877  ;;  %948 = vrot.lane.b32.xlu0 %v866_v25, %s3492_s12  ;;  %944 = vrot.lane.b32.xlu1 %v898_v36, %s3493_s1  ;;  %s4411_s1 = sld [smem:[#allocation4_spill]] }
  0x9f   : > { %v880_v39 = vmul.f32 %v878_v37, %v866_v25  ;;  %s4418_s12 = sld [smem:[#allocation13_spill]] }
  0xa0   : > { %v3699_v42 = vld [vmem:[%s4407_s2] sm:$0xff] }
  0xa2   : > { %936 = vrot.lane.b32.xlu1 %v880_v39, %s4382_s4  ;;  %940 = vrot.lane.b32.xlu0 %v889_v40, %s4384_s8  ;;  %s4408_s4 = sld [smem:[#allocation10_spill]]  ;;  %s3497_s8 = smov 32  }
  0xa4   : > { %v3728_v54 = vld [vmem:[%s4411_s1 + $0x38] sm:$0xff]  ;;  %v3735_v55 = vld [vmem:[%s4411_s1 + $0x30] sm:$0xff]  ;;  %v3742_v56 = vld [vmem:[%s4411_s1 + $0x28] sm:$0xff] }
  0xa5   : > { %3223 = vmatpush3.msra.mxu1 %v3728_v54  ;;  %v3749_v57 = vld [vmem:[%s4411_s1 + $0x20] sm:$0xff]  ;;  %v3755_v58 = vld [vmem:[%s4411_s1 + $0x18] sm:$0xff]  ;;  %v3761_v59 = vld [vmem:[%s4411_s1 + $0x10] sm:$0xff] }
  0xa6   : > { %969 = vperm.xlu0 %3449, %v854_v41   ;;  %3224 = vmatprep.subr.mxu1 %v3485_v19  ;;  %v3768_v60 = vld [vmem:[%s4411_s1 + $0x8] sm:$0xff]  ;;  %v3775_v61 = vld [vmem:[%s4411_s1] sm:$0xff] }
  0xa7   : > { %3225 = vmatpush3.msra.mxu1 %v3735_v55  ;;  %1224 = vrot.lane.b32.xlu1 %v3699_v42, %s3498_s11 }
  0xa8   : > { %v3706_v43 = vld [vmem:[%s4408_s4] sm:$0xff]  ;;  %3226 = vmatprep.subr.mxu1 %v3485_v19  ;;  %s4412_s4 = sld [smem:[#allocation5_spill]] }
  0xa9   : > { %3227 = vmatpush3.msra.mxu1 %v3742_v56 }
  0xaa   : > { %1230 = vrot.lane.b32.xlu0 %v3699_v42, %s3496_s7  ;;  %3228 = vmatprep.subr.mxu1 %v3485_v19 }
  0xab   : > { %3229 = vmatpush3.msra.mxu1 %v3749_v57  ;;  %1227 = vrot.lane.b32.xlu1 %v3699_v42, %s3497_s8 }
  0xac   : > { %3230 = vmatprep.subr.mxu1 %v3485_v19 }
  0xad   : > { %3231 = vmatpush3.msra.mxu1 %v3755_v58 }
  0xae   : > { %1243 = vrot.lane.b32.xlu0 %v3706_v43, %s3497_s8  ;;  %3232 = vmatprep.subr.mxu1 %v3485_v19  ;;  %v3795_v23 = vld [vmem:[%s4412_s4] sm:$0xf]  ;;  %s4419_s4 = sld [smem:[#allocation14_spill]] }
  0xaf   : > { %3233 = vmatpush3.msra.mxu1 %v3761_v59  ;;  %1240 = vrot.lane.b32.xlu1 %v3706_v43, %s3498_s11 }
  0xb0   : > { %3234 = vmatprep.subr.mxu1 %v3485_v19 }
  0xb1   : > { %3235 = vmatpush3.msra.mxu1 %v3768_v60 }
  0xb2   : > { %1275 = vperm.xlu0 %3449, %v1267_v44   ;;  %3236 = vmatprep.subr.mxu1 %v3485_v19 }
  0xb3   : > { %3237 = vmatpush3.msra.mxu1 %v3775_v61  ;;  %1246 = vrot.lane.b32.xlu1 %v3706_v43, %s3496_s7 }
  0xb4   : > { %3241 = vmatprep.subr.mxu1 %v3485_v19 }
  0xb7   : > { %1280 = vperm.xlu1 %3450, %v1268_v34  }
  0xbb   : > { %1627 = vrot.lane.b32.xlu1 %v3670_v14, %s3484_s0  ;;  %s4416_s0 = sld [smem:[#allocation15_spill]] }
 0x107   : > { %v961_v45 = vpop.permute.xlu1 %960 }
 0x108   : > { %v965_v46 = vpop.permute.xlu0 %964 }
 0x109   : > { %3202 = vmatpush3.msra.mxu0 %v965_v46 }
 0x10a   : > { %3203 = vmatprep.subr.mxu0 %v3485_v19 }
 0x10b   : > { %3204 = vmatpush3.msra.mxu0 %v961_v45 }
 0x10c   : > { %v953_v47 = vpop.permute.xlu1 %952  ;;  %3205 = vmatprep.subr.mxu0 %v3485_v19  ;;  %v957_v48 = vpop.permute.xlu0 %956 }
 0x10d   : > { %3206 = vmatpush3.msra.mxu0 %v957_v48 }
 0x10e   : > { %3207 = vmatprep.subr.mxu0 %v3485_v19 }
 0x10f   : > { %3208 = vmatpush3.msra.mxu0 %v953_v47 }
 0x110   : > { %v945_v49 = vpop.permute.xlu1 %944  ;;  %3209 = vmatprep.subr.mxu0 %v3485_v19  ;;  %v949_v50 = vpop.permute.xlu0 %948 }
 0x111   : > { %3210 = vmatpush3.msra.mxu0 %v949_v50 }
 0x112   : > { %3211 = vmatprep.subr.mxu0 %v3485_v19 }
 0x113   : > { %3212 = vmatpush3.msra.mxu0 %v945_v49 }
 0x114   : > { %3213 = vmatprep.subr.mxu0 %v3485_v19  ;;  %v941_v51 = vpop.permute.xlu0 %940  ;;  %v937_v52 = vpop.permute.xlu1 %936 }
 0x115   : > { %3214 = vmatpush3.msra.mxu0 %v941_v51 }
 0x116   : > { %3215 = vmatprep.subr.mxu0 %v3485_v19 }
 0x117   : > { %3216 = vmatpush3.msra.mxu0 %v937_v52 }
 0x118   : > { %3217 = vmatprep.subr.mxu0 %v3485_v19 }
 0x119   : > { %3218 = vmatpush3.msra.mxu0 %v3685_v27  ;;  %v1225_v36 = vpop.permute.xlu1 %1224 }
 0x11a   : > { %3220 = vmatmul.mubr.msk.f32.vlgmr.msra.gmra.mxu0 %vm972_vm4, %v853_v53  ;;  %v1234_v40 = vsel %vm1233_vm8, %v3699_v42, %v1225_v36 }
 0x11b   : > { %3248 = vmatprep.mubr.msk.f32.mxu0 %vm1283_vm7, %v1265_v35 }
 0x11d   : > { %v1228_v37 = vpop.permute.xlu1 %1227 }
 0x11e   : > { %v1236_v46 = vsel %vm1235_vm9, %v1234_v40, %v1228_v37 }
 0x121   : > { %v970_v62 = vpop.permute.xlu0 %969  ;;  %v1241_v39 = vpop.permute.xlu1 %1240 }
 0x122   : > { %v1249_v14 = vsel %vm1233_vm8, %v3706_v43, %v1241_v39 }
 0x125   : > { %v1231_v38 = vpop.permute.xlu0 %1230  ;;  %v1247_v51 = vpop.permute.xlu1 %1246 }
 0x126   : > { %v1238_v52 = vsel %vm1237_vm10, %v1236_v46, %v1231_v38 }
 0x129   : > { %v1244_v49 = vpop.permute.xlu0 %1243 }
 0x12a   : > { %v1250_v42 = vsel %vm1235_vm9, %v1249_v14, %v1244_v49 }
 0x1da   : > { %v1042_v63 = vpop.f32.mrf.mxu0 }
 0x1db   : > { %v3781_v0 = vadd.f32 %v1042_v63, %v970_v62  ;;  %v1251_v62 = vsel %vm1237_vm10, %v1250_v42, %v1247_v51  ;;  %v1610_v42 = vld [vmem:[%s4416_s0] sm:$0xff] }
 0x1dc   : > { %v3221_v1 = vpop.f32.mrf.mxu0 }
 0x1dd   : > { %v1047_v2 = vsel %vm1046_vm5, %v3781_v0, 0.0  ;;  %v1054_v3 = vmul.f32 %v3781_v0, %v3781_v0  ;;  %v1266_v1 = vld [vmem:[%s4413_s27 + $0x8] sm:$0xff] }
 0x1de   : > { %v1048_v4 = vrot.slane %v1047_v2, 4 }
 0x1df   : > { %v1055_v5 = vsel %vm1046_vm5, %v1054_v3, 0.0 }
 0x1e0   : > { %v1049_v6 = vadd.f32 %v1048_v4, %v1047_v2  ;;  %v1056_v7 = vrot.slane %v1055_v5, 4  ;;  %v1276_v2 = vpop.permute.xlu0 %1275 }
 0x1e2   : > { %v1050_v8 = vrot.slane %v1049_v6, 2  ;;  %v1057_v9 = vadd.f32 %v1056_v7, %v1055_v5 }
 0x1e4   : > { %v1051_v10 = vadd.f32 %v1050_v8, %v1049_v6  ;;  %v1058_v11 = vrot.slane %v1057_v9, 2  ;;  %v1613_v8 = vld [vmem:[%s4359_s13 + $0x8] sm:$0xff] }
 0x1e6   : > { %v1052_v12 = vrot.slane %v1051_v10, 1  ;;  %v1059_v16 = vadd.f32 %v1058_v11, %v1057_v9  ;;  %v1612_v9 = vld [vmem:[%s4359_s13] sm:$0xff] }
 0x1e8   : > { %v1060_v17 = vrot.slane %v1059_v16, 1  ;;  %v1053_v18 = vadd.f32 %v1052_v12, %v1051_v10 }
 0x1ea   : > { %v1061_v21 = vadd.f32 %v1060_v17, %v1059_v16 }
 0x1ec   : > { %v1063_v22 = vsel %vm1062_vm6, %v1053_v18, %v1061_v21 }
 0x1ed   : > { %3239 = vmatmul.mubr.msk.f32.vlgmr.msra.gmra.mxu1 %vm1046_vm5, %v1063_v22 }
 0x1ee   : > { %3243 = vmatprep.mubr.msk.f32.mxu1 %vm3488_vm3, %v3485_v19  ;;  %3242 = vmatpush3.msk.msra.mxu1 %vm857_vm0, %v3795_v23 }
 0x1ef   : > { %3251 = vmatprep.subr.mxu1 %v3485_v19 }
 0x2ad   : > { %v1133_v24 = vpop.f32.mrf.mxu1 }
 0x2ae   : > { %v1137_v25 = vmul.f32 0.0078125, %v1133_v24 }
 0x2af   : > { %v3240_v26 = vpop.f32.mrf.mxu1 }
 0x2b0   : > { %v1138_v27 = vmul.f32 %v1137_v25, %v1137_v25 }
 0x2b2   : > { %v1140_v28 = vrot.slane %v1138_v27, 7 }
 0x2b4   : > { %v1142_v29 = vsub.f32 %v1137_v25, %v1140_v28 }
 0x2b6   : > { %v1143_v30 = vmax.f32 %v1142_v29, 0.0 }
 0x2b8   : > { %v1144_v31 = vadd.f32 1e-05, %v1143_v30 }
 0x2ba   : > { %3451 = vrsqrt.f32 %v1144_v31 }
 0x2c7   : > { %v3452_v32 = vpop.eup %3451 }
 0x2c8   : > { %v1146_v33 = vsel %vm1062_vm6, %v1137_v25, %v3452_v32 }
 0x2c9   : > { %3244 = vmatmul.mubr.msk.f32.vlgmr.msra.gmra.mxu1 %vm863_vm1, %v1146_v33 }
 0x2ca   : > { %3252 = vmatpush3.msra.mxu1 %v3728_v54  ;;  %3267 = vmatprep.mubr.msk.f32.mxu1 %vm3488_vm3, %v3485_v19 }
 0x2cb   : > { %3253 = vmatprep.subr.mxu1 %v3485_v19 }
 0x2cc   : > { %3254 = vmatpush3.msra.mxu1 %v3735_v55 }
 0x2cd   : > { %3255 = vmatprep.subr.mxu1 %v3485_v19 }
 0x2ce   : > { %3256 = vmatpush3.msra.mxu1 %v3742_v56 }
 0x2cf   : > { %3257 = vmatprep.subr.mxu1 %v3485_v19 }
 0x2d0   : > { %3258 = vmatpush3.msra.mxu1 %v3749_v57 }
 0x2d1   : > { %3259 = vmatprep.subr.mxu1 %v3485_v19 }
 0x2d2   : > { %3260 = vmatpush3.msra.mxu1 %v3755_v58 }
 0x2d3   : > { %3261 = vmatprep.subr.mxu1 %v3485_v19 }
 0x2d4   : > { %3262 = vmatpush3.msra.mxu1 %v3761_v59 }
 0x2d5   : > { %3263 = vmatprep.subr.mxu1 %v3485_v19 }
 0x2d6   : > { %3264 = vmatpush3.msra.mxu1 %v3768_v60 }
 0x2d7   : > { %3265 = vmatprep.subr.mxu1 %v3485_v19 }
 0x2d8   : > { %3266 = vmatpush3.msra.mxu1 %v3775_v61 }
 0x2d9   : > { %3303 = vmatprep.subr.mxu1 %v3485_v19 }
 0x389   : > { %v1219_v41 = vpop.f32.mrf.mxu1 }
 0x38a   : > { %v1255_v44 = vrot.slane %v1219_v41, %v3681_v20  ;;  %v1260_v48 = vrot.slane %v1219_v41, %v3672_v15 }
 0x38b   : > { %v3245_v45 = vpop.f32.mrf.mxu1 }
 0x38c   : > { %v1256_v47 = vsub.f32 %v3781_v0, %v1255_v44  ;;  %v1281_v0 = vpop.permute.xlu1 %1280 }
 0x38e   : > { %v1261_v50 = vmul.f32 %v1260_v48, %v1256_v47 }
 0x390   : > { %v1262_v53 = vmul.f32 %v1261_v50, %v1238_v52  ;;  %v3858_v4 = vpop.permute.xlu1 %1627 }
 0x392   : > { %v1263_v63 = vadd.f32 %v1262_v53, %v1251_v62 }
 0x394   : > { %v1264_v43 = vmax.f32 %v1263_v63, 0.0  ;;  %v1611_v63 = vld [vmem:[%s4416_s0 + $0x8] sm:$0xff] }
 0x396   : > { %1619 = vrot.lane.b32.xlu0 %v1264_v43, %s4386_s10  ;;  %3246 = vmatprep.subr.mxu0 %v1264_v43 }
 0x397   : > { %3247 = vmatpush3.msra.mxu0 %v1264_v43 }
 0x398   : > { %3249 = vmatmul.mubr.msk.f32.vlgmr.msra.gmra.mxu0 %vm1283_vm7, %v1266_v1  ;;  %3270 = vmatprep.subr.mxu0 %v3485_v19 }
 0x399   : > { %3271 = vmatpush3.msk.msra.mxu0 %vm857_vm0, %v3795_v23  ;;  %3272 = vmatprep.mubr.msk.f32.mxu0 %vm3488_vm3, %v3485_v19 }
 0x408   : > { %v1620_v3 = vpop.permute.xlu0 %1619 }
 0x409   : > { %v1623_v5 = vsel %vm1622_vm11, 0.0, %v1620_v3 }
 0x40a   : > { %v1625_v6 = vsel %vm1624_vm12, %v1623_v5, 0.0 }
 0x40b   : > { %1632 = vrot.lane.b32.xlu1 %v1625_v6, %s4414_s29  ;;  %v1630_v7 = vmul.f32 %v3858_v4, %v1625_v6  ;;  %v1626_v62 = vmul.f32 %v1625_v6, %v3668_v13 }
 0x40d   : > { %1636 = vrot.lane.b32.xlu0 %v1630_v7, %s4415_s5 }
 0x40f   : > { %1646 = vperm.xlu1 %3450, %v1613_v8  }
 0x411   : > { %1641 = vperm.xlu0 %3449, %v1612_v9  }
 0x458   : > { %v3250_v10 = vpop.f32.mrf.mxu0 }
 0x459   : > { %v3871_v11 = vadd.f32 %v3250_v10, %v1281_v0 }
 0x45a   : > { %v1356_v12 = vpop.f32.mrf.mxu0 }
 0x45b   : > { %v1375_v16 = vmul.f32 %v3871_v11, %v3871_v11  ;;  %v3875_v17 = vadd.f32 %v1356_v12, %v1276_v2  ;;  %v1366_v18 = vsel %vm1046_vm5, %v3871_v11, 0.0 }
 0x45d   : > { %v1365_v21 = vsel %vm1046_vm5, %v3875_v17, 0.0  ;;  %v1374_v22 = vmul.f32 %v3875_v17, %v3875_v17  ;;  %v1377_v25 = vsel %vm1046_vm5, %v1375_v16, 0.0 }
 0x45e   : > { %v1367_v24 = vadd.f32 %v1366_v18, %v1365_v21 }
 0x45f   : > { %v1376_v26 = vsel %vm1046_vm5, %v1374_v22, 0.0 }
 0x460   : > { %v1368_v27 = vrot.slane %v1367_v24, 4  ;;  %v1378_v28 = vadd.f32 %v1377_v25, %v1376_v26 }
 0x462   : > { %v1369_v29 = vadd.f32 %v1368_v27, %v1367_v24  ;;  %v1379_v30 = vrot.slane %v1378_v28, 4 }
 0x464   : > { %v1370_v31 = vrot.slane %v1369_v29, 2  ;;  %v1380_v32 = vadd.f32 %v1379_v30, %v1378_v28 }
 0x466   : > { %v1371_v33 = vadd.f32 %v1370_v31, %v1369_v29  ;;  %v1381_v34 = vrot.slane %v1380_v32, 2 }
 0x468   : > { %v1372_v35 = vrot.slane %v1371_v33, 1  ;;  %v1382_v36 = vadd.f32 %v1381_v34, %v1380_v32 }
 0x46a   : > { %v1383_v37 = vrot.slane %v1382_v36, 1  ;;  %v1373_v38 = vadd.f32 %v1372_v35, %v1371_v33 }
 0x46c   : > { %v1384_v39 = vadd.f32 %v1383_v37, %v1382_v36  ;;  %v1615_v37 = vld [vmem:[%s4360_s14 + $0x8] sm:$0xff] }
 0x46d   : > { %1918 = vrot.lane.b32.xlu1 %v1615_v37, %s3497_s8  ;;  %1912 = vrot.lane.b32.xlu0 %v1615_v37, %s3498_s11 }
 0x46e   : > { %v1385_v40 = vsel %vm1062_vm6, %v1373_v38, %v1384_v39  ;;  %v1614_v38 = vld [vmem:[%s4360_s14] sm:$0xff]  ;;  %v1617_v39 = vld [vmem:[%s4361_s15 + $0x8] sm:$0xff] }
 0x46f   : > { %3268 = vmatmul.mubr.msk.f32.vlgmr.msra.gmra.mxu1 %vm1046_vm5, %v1385_v40  ;;  %v1616_v40 = vld [vmem:[%s4361_s15] sm:$0xff] }
 0x470   : > { %3304 = vmatpush3.msk.msra.mxu1 %vm857_vm0, %v3795_v23  ;;  %3305 = vmatprep.mubr.msk.f32.mxu1 %vm3488_vm3, %v3485_v19 }
 0x471   : > { %1924 = vrot.lane.b32.xlu1 %v1615_v37, %s3496_s7  ;;  %1910 = vrot.lane.b32.xlu0 %v1614_v38, %s3498_s11 }
 0x475   : > { %1916 = vrot.lane.b32.xlu1 %v1614_v38, %s3497_s8  ;;  %1938 = vrot.lane.b32.xlu0 %v1617_v39, %s3498_s11 }
 0x479   : > { %1922 = vrot.lane.b32.xlu1 %v1614_v38, %s3496_s7  ;;  %1944 = vrot.lane.b32.xlu0 %v1617_v39, %s3497_s8 }
 0x47d   : > { %v1633_v53 = vpop.permute.xlu1 %1632  ;;  %1950 = vrot.lane.b32.xlu1 %v1617_v39, %s3496_s7  ;;  %1936 = vrot.lane.b32.xlu0 %v1616_v40, %s3498_s11 }
 0x47f   : > { %v1637_v41 = vpop.permute.xlu0 %1636 }
 0x480   : > { %3275 = vmatprep.subr.mxu0 %v1637_v41 }
 0x481   : > { %1942 = vrot.lane.b32.xlu0 %v1616_v40, %s3497_s8  ;;  %1948 = vrot.lane.b32.xlu1 %v1616_v40, %s3496_s7 }
 0x48a   : > { %v1647_v0 = vpop.permute.xlu1 %1646 }
 0x48c   : > { %v1642_v5 = vpop.permute.xlu0 %1641 }
 0x52f   : > { %v1455_v44 = vpop.f32.mrf.mxu1 }
 0x530   : > { %v1459_v14 = vmul.f32 0.00390625, %v1455_v44 }
 0x531   : > { %v3269_v45 = vpop.f32.mrf.mxu1 }
 0x532   : > { %v1460_v46 = vmul.f32 %v1459_v14, %v1459_v14 }
 0x534   : > { %v1462_v47 = vrot.slane %v1460_v46, 7 }
 0x536   : > { %v1464_v48 = vsub.f32 %v1459_v14, %v1462_v47 }
 0x538   : > { %v1465_v49 = vmax.f32 %v1464_v48, 0.0 }
 0x53a   : > { %v1466_v50 = vadd.f32 1e-05, %v1465_v49 }
 0x53c   : > { %3453 = vrsqrt.f32 %v1466_v50 }
 0x549   : > { %v3454_v51 = vpop.eup %3453 }
 0x54a   : > { %v1468_v52 = vsel %vm1062_vm6, %v1459_v14, %v3454_v51 }
 0x54b   : > { %3273 = vmatmul.mubr.msk.f32.vlgmr.msra.gmra.mxu0 %vm863_vm1, %v1468_v52  ;;  %v1919_v52 = vpop.permute.xlu1 %1918 }
 0x54c   : > { %3276 = vmatpush3.msra.mxu0 %v1637_v41  ;;  %3281 = vmatprep.mubr.msk.f32.mxu0 %vm1649_vm13, %v1610_v42  ;;  %v1913_v42 = vpop.permute.xlu0 %1912 }
 0x54d   : > { %3277 = vmatprep.subr.mxu0 %v1633_v53 }
 0x54e   : > { %3278 = vmatpush3.msra.mxu0 %v1633_v53 }
 0x54f   : > { %3279 = vmatprep.subr.mxu0 %v1626_v62 }
 0x550   : > { %3280 = vmatpush3.msra.mxu0 %v1626_v62  ;;  %v1911_v53 = vpop.permute.xlu0 %1910  ;;  %v1925_v62 = vpop.permute.xlu1 %1924 }
 0x551   : > { %3282 = vmatmul.mubr.msk.f32.vlgmr.msra.gmra.mxu0 %vm1649_vm13, %v1611_v63  ;;  %3284 = vmatprep.subr.mxu0 %v3485_v19 }
 0x552   : > { %3285 = vmatpush3.msra.mxu0 %v3728_v54  ;;  %3300 = vmatprep.mubr.msk.f32.mxu0 %vm3488_vm3, %v3485_v19 }
 0x553   : > { %3286 = vmatprep.subr.mxu0 %v3485_v19 }
 0x554   : > { %3287 = vmatpush3.msra.mxu0 %v3735_v55  ;;  %v1939_v63 = vpop.permute.xlu0 %1938 }
 0x555   : > { %3288 = vmatprep.subr.mxu0 %v3485_v19 }
 0x556   : > { %3289 = vmatpush3.msra.mxu0 %v3742_v56 }
 0x557   : > { %3290 = vmatprep.subr.mxu0 %v3485_v19 }
 0x558   : > { %3291 = vmatpush3.msra.mxu0 %v3749_v57 }
 0x559   : > { %3292 = vmatprep.subr.mxu0 %v3485_v19 }
 0x55a   : > { %3293 = vmatpush3.msra.mxu0 %v3755_v58 }
 0x55b   : > { %3294 = vmatprep.subr.mxu0 %v3485_v19 }
 0x55c   : > { %3295 = vmatpush3.msra.mxu0 %v3761_v59 }
 0x55d   : > { %3296 = vmatprep.subr.mxu0 %v3485_v19 }
 0x55e   : > { %3297 = vmatpush3.msra.mxu0 %v3768_v60 }
 0x55f   : > { %3298 = vmatprep.subr.mxu0 %v3485_v19 }
 0x560   : > { %3299 = vmatpush3.msra.mxu0 %v3775_v61 }
 0x561   : > { %3323 = vmatprep.subr.mxu0 %v3485_v19 }
 0x60b   : > { %v3919_v43 = vpop.f32.mrf.mxu0 }
 0x60d   : > { %v3274_v1 = vpop.f32.mrf.mxu0 }
 0x60e   : > { %v1917_v1 = vpop.permute.xlu1 %1916 }
 0x611   : > { %v3283_v2 = vpop.f32.mrf.mxu0 }
 0x612   : > { %v3921_v3 = vadd.f32 %v3283_v2, %v1647_v0  ;;  %v1945_v0 = vpop.permute.xlu0 %1944  ;;  %v1923_v2 = vpop.permute.xlu1 %1922 }
 0x613   : > { %v1722_v6 = vpop.f32.mrf.mxu0 }
 0x614   : > { %v1741_v7 = vmul.f32 %v3921_v3, %v3921_v3  ;;  %v3925_v8 = vadd.f32 %v1722_v6, %v1642_v5  ;;  %v1732_v9 = vsel %vm1046_vm5, %v3921_v3, 0.0  ;;  %v1929_v6 = vsel %vm1233_vm8, %v1615_v37, %v1913_v42  ;;  %v1980_v42 = vld [vmem:[%s4363_s17] sm:$0xff] }
 0x616   : > { %v1731_v10 = vsel %vm1046_vm5, %v3925_v8, 0.0  ;;  %v1740_v12 = vmul.f32 %v3925_v8, %v3925_v8  ;;  %v1743_v18 = vsel %vm1046_vm5, %v1741_v7, 0.0  ;;  %v1937_v5 = vpop.permute.xlu0 %1936  ;;  %v1928_v7 = vsel %vm1233_vm8, %v1614_v38, %v1911_v53 }
 0x617   : > { %v1733_v16 = vadd.f32 %v1732_v9, %v1731_v10  ;;  %v1951_v9 = vpop.permute.xlu1 %1950 }
 0x618   : > { %v1742_v21 = vsel %vm1046_vm5, %v1740_v12, 0.0  ;;  %v1954_v12 = vsel %vm1233_vm8, %v1616_v40, %v1937_v5  ;;  %v1979_v5 = vld [vmem:[%s4362_s16 + $0x8] sm:$0xff] }
 0x619   : > { %v1734_v22 = vrot.slane %v1733_v16, 4  ;;  %v1744_v24 = vadd.f32 %v1743_v18, %v1742_v21  ;;  %v1931_v21 = vsel %vm1235_vm9, %v1929_v6, %v1919_v52  ;;  %v1981_v52 = vld [vmem:[%s4363_s17 + $0x8] sm:$0xff] }
 0x61b   : > { %v1735_v25 = vadd.f32 %v1734_v22, %v1733_v16  ;;  %v1745_v26 = vrot.slane %v1744_v24, 4  ;;  %v1943_v16 = vpop.permute.xlu0 %1942  ;;  %v1930_v22 = vsel %vm1235_vm9, %v1928_v7, %v1917_v1 }
 0x61d   : > { %v1736_v27 = vrot.slane %v1735_v25, 2  ;;  %v1746_v28 = vadd.f32 %v1745_v26, %v1744_v24  ;;  %v1955_v24 = vsel %vm1233_vm8, %v1617_v39, %v1939_v63 }
 0x61f   : > { %v1737_v29 = vadd.f32 %v1736_v27, %v1735_v25  ;;  %v1747_v30 = vrot.slane %v1746_v28, 2 }
 0x621   : > { %v1738_v31 = vrot.slane %v1737_v29, 1  ;;  %v1748_v32 = vadd.f32 %v1747_v30, %v1746_v28  ;;  %v1949_v30 = vpop.permute.xlu1 %1948 }
 0x623   : > { %v1749_v33 = vrot.slane %v1748_v32, 1  ;;  %v1739_v34 = vadd.f32 %v1738_v31, %v1737_v29  ;;  %v1956_v29 = vsel %vm1235_vm9, %v1954_v12, %v1943_v16  ;;  %v1957_v31 = vsel %vm1235_vm9, %v1955_v24, %v1945_v0 }
 0x625   : > { %v1750_v35 = vadd.f32 %v1749_v33, %v1748_v32 }
 0x627   : > { %v1751_v36 = vsel %vm1062_vm6, %v1739_v34, %v1750_v35  ;;  %v1933_v34 = vsel %vm1237_vm10, %v1931_v21, %v1925_v62  ;;  %v1932_v35 = vsel %vm1237_vm10, %v1930_v22, %v1923_v2 }
 0x628   : > { %3301 = vmatmul.mubr.msk.f32.vlgmr.msra.gmra.mxu0 %vm1046_vm5, %v1751_v36  ;;  %v1958_v36 = vsel %vm1237_vm10, %v1956_v29, %v1949_v30 }
 0x629   : > { %3324 = vmatpush3.msra.mxu0 %v3728_v54  ;;  %3339 = vmatprep.mubr.msk.f32.mxu0 %vm3488_vm3, %v3485_v19 }
 0x62a   : > { %3325 = vmatprep.subr.mxu0 %v3485_v19 }
 0x62b   : > { %3326 = vmatpush3.msra.mxu0 %v3735_v55 }
 0x62c   : > { %3327 = vmatprep.subr.mxu0 %v3485_v19 }
 0x62d   : > { %3328 = vmatpush3.msra.mxu0 %v3742_v56 }
 0x62e   : > { %3329 = vmatprep.subr.mxu0 %v3485_v19 }
 0x62f   : > { %3330 = vmatpush3.msra.mxu0 %v3749_v57 }
 0x630   : > { %3331 = vmatprep.subr.mxu0 %v3485_v19 }
 0x631   : > { %3332 = vmatpush3.msra.mxu0 %v3755_v58 }
 0x632   : > { %3333 = vmatprep.subr.mxu0 %v3485_v19 }
 0x633   : > { %3334 = vmatpush3.msra.mxu0 %v3761_v59 }
 0x634   : > { %3335 = vmatprep.subr.mxu0 %v3485_v19 }
 0x635   : > { %3336 = vmatpush3.msra.mxu0 %v3768_v60 }
 0x636   : > { %3337 = vmatprep.subr.mxu0 %v3485_v19 }
 0x637   : > { %3338 = vmatpush3.msra.mxu0 %v3775_v61 }
 0x638   : > { %3362 = vmatprep.subr.mxu0 %v3485_v19 }
 0x6e8   : > { %v1821_v41 = vpop.f32.mrf.mxu0 }
 0x6e9   : > { %v1825_v44 = vmul.f32 0.00390625, %v1821_v41 }
 0x6ea   : > { %v3302_v14 = vpop.f32.mrf.mxu0 }
 0x6eb   : > { %v1826_v45 = vmul.f32 %v1825_v44, %v1825_v44 }
 0x6ed   : > { %v1828_v46 = vrot.slane %v1826_v45, 7 }
 0x6ef   : > { %v1830_v47 = vsub.f32 %v1825_v44, %v1828_v46 }
 0x6f1   : > { %v1831_v48 = vmax.f32 %v1830_v47, 0.0 }
 0x6f3   : > { %v1832_v49 = vadd.f32 1e-05, %v1831_v48 }
 0x6f5   : > { %3455 = vrsqrt.f32 %v1832_v49  ;;  %v1978_v49 = vld [vmem:[%s4362_s16] sm:$0xff] }
 0x702   : > { %v3456_v50 = vpop.eup %3455 }
 0x703   : > { %v1834_v51 = vsel %vm1062_vm6, %v1825_v44, %v3456_v50 }
 0x704   : > { %3306 = vmatmul.mubr.msk.f32.vlgmr.msra.gmra.mxu1 %vm863_vm1, %v1834_v51 }
 0x705   : > { %3320 = vmatprep.mubr.msk.f32.mxu1 %vm1237_vm10, %v1978_v49 }
 0x7c4   : > { %v1904_v10 = vpop.f32.mrf.mxu1 }
 0x7c5   : > { %v1963_v18 = vrot.slane %v1904_v10, %v3681_v20  ;;  %v1969_v28 = vrot.slane %v1904_v10, %v3672_v15 }
 0x7c6   : > { %v3307_v25 = vpop.f32.mrf.mxu1 }
 0x7c7   : > { %v1964_v26 = vsub.f32 %v3925_v8, %v1963_v18  ;;  %v1965_v27 = vsub.f32 %v3921_v3, %v1963_v18  ;;  %v1959_v8 = vsel %vm1237_vm10, %v1957_v31, %v1951_v9 }
 0x7c9   : > { %v1970_v32 = vmul.f32 %v1969_v28, %v1964_v26  ;;  %v1971_v33 = vmul.f32 %v1969_v28, %v1965_v27 }
 0x7cb   : > { %v1973_v37 = vmul.f32 %v1971_v33, %v1933_v34  ;;  %v1972_v38 = vmul.f32 %v1970_v32, %v1932_v35 }
 0x7cd   : > { %v1974_v3 = vadd.f32 %v1972_v38, %v1958_v36  ;;  %v1975_v39 = vadd.f32 %v1973_v37, %v1959_v8 }
 0x7cf   : > { %v1976_v40 = vmax.f32 %v1974_v3, 0.0  ;;  %v1977_v41 = vmax.f32 %v1975_v39, 0.0 }
 0x7d1   : > { %1990 = vrot.lane.b32.xlu0 %v1977_v41, %s4417_s3  ;;  %1988 = vrot.lane.b32.xlu1 %v1976_v40, %s4417_s3 }
 0x843   : > { %v1991_v44 = vpop.permute.xlu0 %1990  ;;  %v1989_v14 = vpop.permute.xlu1 %1988 }
 0x844   : > { %v1995_v45 = vsel %vm1622_vm11, 0.0, %v1991_v44  ;;  %v1994_v46 = vsel %vm1622_vm11, 0.0, %v1989_v14 }
 0x845   : > { %v1997_v47 = vsel %vm1624_vm12, %v1995_v45, 0.0  ;;  %v1996_v48 = vsel %vm1624_vm12, %v1994_v46, 0.0 }
 0x846   : > { %v2001_v50 = vmul.f32 %v1997_v47, %v3858_v4  ;;  %v2000_v51 = vmul.f32 %v1996_v48, %v3858_v4  ;;  %v1999_v0 = vmul.f32 %v1997_v47, %v3668_v13  ;;  %v1998_v2 = vmul.f32 %v1996_v48, %v3668_v13 }
 0x848   : > { %2014 = vrot.lane.b32.xlu0 %v2001_v50, %s4415_s5  ;;  %2012 = vrot.lane.b32.xlu1 %v2000_v51, %s4415_s5 }
 0x84c   : > { %2006 = vrot.lane.b32.xlu0 %v1997_v47, %s4414_s29  ;;  %2004 = vrot.lane.b32.xlu1 %v1996_v48, %s4414_s29 }
 0x850   : > { %2020 = vperm.xlu0 %3449, %v1980_v42   ;;  %2025 = vperm.xlu1 %3450, %v1981_v52  }
 0x8ba   : > { %v2015_v53 = vpop.permute.xlu0 %2014  ;;  %v2013_v62 = vpop.permute.xlu1 %2012 }
 0x8bb   : > { %3308 = vmatprep.subr.mxu1 %v2015_v53 }
 0x8bc   : > { %3309 = vmatpush3.msra.mxu1 %v2015_v53 }
 0x8bd   : > { %3310 = vmatprep.subr.mxu1 %v2013_v62 }
 0x8be   : > { %v2007_v63 = vpop.permute.xlu0 %2006  ;;  %3311 = vmatpush3.msra.mxu1 %v2013_v62  ;;  %v2005_v1 = vpop.permute.xlu1 %2004 }
 0x8bf   : > { %3312 = vmatprep.subr.mxu1 %v2007_v63 }
 0x8c0   : > { %3313 = vmatpush3.msra.mxu1 %v2007_v63 }
 0x8c1   : > { %3314 = vmatprep.subr.mxu1 %v2005_v1 }
 0x8c2   : > { %3315 = vmatpush3.msra.mxu1 %v2005_v1 }
 0x8c3   : > { %3316 = vmatprep.subr.mxu1 %v1999_v0 }
 0x8c4   : > { %3317 = vmatpush3.msra.mxu1 %v1999_v0 }
 0x8c5   : > { %3318 = vmatprep.subr.mxu1 %v1998_v2 }
 0x8c6   : > { %3319 = vmatpush3.msra.mxu1 %v1998_v2 }
 0x8c7   : > { %3321 = vmatmul.mubr.msk.f32.vlgmr.msra.gmra.mxu1 %vm1237_vm10, %v1979_v5  ;;  %3342 = vmatprep.subr.mxu1 %v3485_v19 }
 0x8c8   : > { %3343 = vmatpush3.msk.msra.mxu1 %vm857_vm0, %v3795_v23  ;;  %3344 = vmatprep.mubr.msk.f32.mxu1 %vm3488_vm3, %v3485_v19 }
 0x8cb   : > { %v2026_v6 = vpop.permute.xlu1 %2025  ;;  %v2021_v10 = vpop.permute.xlu0 %2020 }
 0x987   : > { %v3322_v7 = vpop.f32.mrf.mxu1 }
 0x988   : > { %v4030_v9 = vadd.f32 %v3322_v7, %v2026_v6 }
 0x989   : > { %v2100_v12 = vpop.f32.mrf.mxu1 }
 0x98a   : > { %v2119_v16 = vmul.f32 %v4030_v9, %v4030_v9  ;;  %v4034_v18 = vadd.f32 %v2100_v12, %v2021_v10  ;;  %v2110_v21 = vsel %vm1046_vm5, %v4030_v9, 0.0 }
 0x98c   : > { %v2109_v22 = vsel %vm1046_vm5, %v4034_v18, 0.0  ;;  %v2118_v24 = vmul.f32 %v4034_v18, %v4034_v18  ;;  %v2121_v26 = vsel %vm1046_vm5, %v2119_v16, 0.0 }
 0x98d   : > { %v2111_v25 = vadd.f32 %v2110_v21, %v2109_v22 }
 0x98e   : > { %v2120_v27 = vsel %vm1046_vm5, %v2118_v24, 0.0 }
 0x98f   : > { %v2112_v28 = vrot.slane %v2111_v25, 4  ;;  %v2122_v29 = vadd.f32 %v2121_v26, %v2120_v27 }
 0x991   : > { %v2113_v30 = vadd.f32 %v2112_v28, %v2111_v25  ;;  %v2123_v31 = vrot.slane %v2122_v29, 4 }
 0x993   : > { %v2114_v32 = vrot.slane %v2113_v30, 2  ;;  %v2124_v33 = vadd.f32 %v2123_v31, %v2122_v29 }
 0x995   : > { %v2115_v34 = vadd.f32 %v2114_v32, %v2113_v30  ;;  %v2125_v35 = vrot.slane %v2124_v33, 2 }
 0x997   : > { %v2116_v36 = vrot.slane %v2115_v34, 1  ;;  %v2126_v37 = vadd.f32 %v2125_v35, %v2124_v33 }
 0x999   : > { %v2127_v38 = vrot.slane %v2126_v37, 1  ;;  %v2117_v8 = vadd.f32 %v2116_v36, %v2115_v34 }
 0x99b   : > { %v2128_v3 = vadd.f32 %v2127_v38, %v2126_v37 }
 0x99d   : > { %v2129_v39 = vsel %vm1062_vm6, %v2117_v8, %v2128_v3 }
 0x99e   : > { %3340 = vmatmul.mubr.msk.f32.vlgmr.msra.gmra.mxu0 %vm1046_vm5, %v2129_v39 }
 0x99f   : > { %3363 = vmatpush3.msra.mxu0 %v3728_v54  ;;  %3378 = vmatprep.mubr.msk.f32.mxu0 %vm3488_vm3, %v3485_v19  ;;  %v1983_v54 = vld [vmem:[%s4364_s18 + $0x8] sm:$0xff] }
 0x9a0   : > { %3364 = vmatprep.subr.mxu0 %v3485_v19  ;;  %2296 = vrot.lane.b32.xlu1 %v1983_v54, %s3497_s8 }
 0x9a1   : > { %3365 = vmatpush3.msra.mxu0 %v3735_v55  ;;  %2290 = vrot.lane.b32.xlu0 %v1983_v54, %s3498_s11  ;;  %v1982_v55 = vld [vmem:[%s4364_s18] sm:$0xff] }
 0x9a2   : > { %3366 = vmatprep.subr.mxu0 %v3485_v19 }
 0x9a3   : > { %3367 = vmatpush3.msra.mxu0 %v3742_v56  ;;  %v1985_v56 = vld [vmem:[%s4365_s19 + $0x8] sm:$0xff] }
 0x9a4   : > { %3368 = vmatprep.subr.mxu0 %v3485_v19  ;;  %2302 = vrot.lane.b32.xlu1 %v1983_v54, %s3496_s7 }
 0x9a5   : > { %3369 = vmatpush3.msra.mxu0 %v3749_v57  ;;  %2288 = vrot.lane.b32.xlu0 %v1982_v55, %s3498_s11  ;;  %v1984_v57 = vld [vmem:[%s4365_s19] sm:$0xff] }
 0x9a6   : > { %3370 = vmatprep.subr.mxu0 %v3485_v19 }
 0x9a7   : > { %3371 = vmatpush3.msra.mxu0 %v3755_v58 }
 0x9a8   : > { %3372 = vmatprep.subr.mxu0 %v3485_v19  ;;  %2294 = vrot.lane.b32.xlu1 %v1982_v55, %s3497_s8 }
 0x9a9   : > { %3373 = vmatpush3.msra.mxu0 %v3761_v59  ;;  %2316 = vrot.lane.b32.xlu0 %v1985_v56, %s3498_s11 }
 0x9aa   : > { %3374 = vmatprep.subr.mxu0 %v3485_v19 }
 0x9ab   : > { %3375 = vmatpush3.msra.mxu0 %v3768_v60 }
 0x9ac   : > { %3376 = vmatprep.subr.mxu0 %v3485_v19  ;;  %2300 = vrot.lane.b32.xlu1 %v1982_v55, %s3496_s7 }
 0x9ad   : > { %3377 = vmatpush3.msra.mxu0 %v3775_v61  ;;  %2322 = vrot.lane.b32.xlu0 %v1985_v56, %s3497_s8 }
 0x9b0   : > { %2328 = vrot.lane.b32.xlu1 %v1985_v56, %s3496_s7 }
 0x9b1   : > { %2314 = vrot.lane.b32.xlu0 %v1984_v57, %s3498_s11 }
 0x9b4   : > { %2326 = vrot.lane.b32.xlu1 %v1984_v57, %s3496_s7 }
 0x9b5   : > { %2320 = vrot.lane.b32.xlu0 %v1984_v57, %s3497_s8 }
 0xa12   : > { %v2297_v48 = vpop.permute.xlu1 %2296 }
 0xa13   : > { %v2291_v47 = vpop.permute.xlu0 %2290 }
 0xa14   : > { %v2307_v63 = vsel %vm1233_vm8, %v1983_v54, %v2291_v47  ;;  %v4205_v47 = vld [vmem:[%s4419_s4 + $0x8] sm:$0xff] }
 0xa15   : > { %v2309_v10 = vsel %vm1235_vm9, %v2307_v63, %v2297_v48  ;;  %v2741_v48 = vld [vmem:[%s4371_s25 + $0x8] sm:$0x3] }
 0xa16   : > { %v2303_v50 = vpop.permute.xlu1 %2302 }
 0xa17   : > { %v2289_v49 = vpop.permute.xlu0 %2288  ;;  %v2311_v31 = vsel %vm1237_vm10, %v2309_v10, %v2303_v50  ;;  %v2743_v50 = vld [vmem:[#allocation2] sm:$0x1] }
 0xa18   : > { %v2306_v1 = vsel %vm1233_vm8, %v1982_v55, %v2289_v49  ;;  %v2740_v49 = vld [vmem:[%s4371_s25] sm:$0xff] }
 0xa1a   : > { %v2295_v42 = vpop.permute.xlu1 %2294 }
 0xa1b   : > { %v2317_v51 = vpop.permute.xlu0 %2316  ;;  %v2308_v12 = vsel %vm1235_vm9, %v2306_v1, %v2295_v42  ;;  %v2357_v1 = vld [vmem:[%s4366_s20 + $0x8] sm:$0xff] }
 0xa1c   : > { %v2333_v16 = vsel %vm1233_vm8, %v1985_v56, %v2317_v51 }
 0xa1e   : > { %v2301_v53 = vpop.permute.xlu1 %2300 }
 0xa1f   : > { %v2323_v52 = vpop.permute.xlu0 %2322  ;;  %v2310_v32 = vsel %vm1237_vm10, %v2308_v12, %v2301_v53 }
 0xa20   : > { %v2335_v28 = vsel %vm1235_vm9, %v2333_v16, %v2323_v52 }
 0xa22   : > { %v2329_v0 = vpop.permute.xlu1 %2328 }
 0xa23   : > { %v2315_v62 = vpop.permute.xlu0 %2314 }
 0xa24   : > { %v2332_v5 = vsel %vm1233_vm8, %v1984_v57, %v2315_v62  ;;  %v2356_v57 = vld [vmem:[%s4366_s20] sm:$0xff] }
 0xa26   : > { %v2327_v27 = vpop.permute.xlu1 %2326 }
 0xa27   : > { %v2321_v6 = vpop.permute.xlu0 %2320 }
 0xa28   : > { %v2334_v26 = vsel %vm1235_vm9, %v2332_v5, %v2321_v6 }
 0xa29   : > { %v2336_v33 = vsel %vm1237_vm10, %v2334_v26, %v2327_v27 }
 0xa5e   : > { %v2199_v58 = vpop.f32.mrf.mxu0 }
 0xa5f   : > { %v2203_v59 = vmul.f32 0.00390625, %v2199_v58 }
 0xa60   : > { %v3341_v60 = vpop.f32.mrf.mxu0 }
 0xa61   : > { %v2204_v61 = vmul.f32 %v2203_v59, %v2203_v59  ;;  %v2358_v60 = vld [vmem:[%s4367_s21] sm:$0xff] }
 0xa63   : > { %v2206_v40 = vrot.slane %v2204_v61, 7  ;;  %v2359_v61 = vld [vmem:[%s4367_s21 + $0x8] sm:$0xff] }
 0xa65   : > { %v2208_v41 = vsub.f32 %v2203_v59, %v2206_v40  ;;  %v4139_v40 = vld [vmem:[%s4368_s22 + $0x8] sm:$0xff] }
 0xa67   : > { %v2209_v44 = vmax.f32 %v2208_v41, 0.0  ;;  %v4148_v41 = vld [vmem:[%s4418_s12] sm:$0xff] }
 0xa69   : > { %v2210_v14 = vadd.f32 1e-05, %v2209_v44  ;;  %v4161_v44 = vld [vmem:[%s4369_s23] sm:$0xff] }
 0xa6b   : > { %3457 = vrsqrt.f32 %v2210_v14  ;;  %v4166_v14 = vld [vmem:[%s4418_s12 + $0x8] sm:$0xff] }
 0xa78   : > { %v3458_v45 = vpop.eup %3457 }
 0xa79   : > { %v2212_v46 = vsel %vm1062_vm6, %v2203_v59, %v3458_v45  ;;  %v4179_v45 = vld [vmem:[%s4369_s23 + $0x8] sm:$0xff] }
 0xa7a   : > { %3345 = vmatmul.mubr.msk.f32.vlgmr.msra.gmra.mxu1 %vm863_vm1, %v2212_v46  ;;  %v4192_v46 = vld [vmem:[%s4419_s4] sm:$0xff] }
 0xa7b   : > { %3359 = vmatprep.mubr.msk.f32.mxu1 %vm1237_vm10, %v2356_v57 }
 0xb3a   : > { %v2282_v2 = vpop.f32.mrf.mxu1 }
 0xb3b   : > { %v2341_v7 = vrot.slane %v2282_v2, %v3681_v20  ;;  %v2347_v25 = vrot.slane %v2282_v2, %v3672_v15 }
 0xb3c   : > { %v3346_v21 = vpop.f32.mrf.mxu1 }
 0xb3d   : > { %v2342_v22 = vsub.f32 %v4034_v18, %v2341_v7  ;;  %v2343_v24 = vsub.f32 %v4030_v9, %v2341_v7  ;;  %v2337_v18 = vsel %vm1237_vm10, %v2335_v28, %v2329_v0 }
 0xb3f   : > { %v2348_v29 = vmul.f32 %v2347_v25, %v2342_v22  ;;  %v2349_v30 = vmul.f32 %v2347_v25, %v2343_v24 }
 0xb41   : > { %v2351_v34 = vmul.f32 %v2349_v30, %v2311_v31  ;;  %v2350_v35 = vmul.f32 %v2348_v29, %v2310_v32 }
 0xb43   : > { %v2352_v9 = vadd.f32 %v2350_v35, %v2336_v33  ;;  %v2353_v36 = vadd.f32 %v2351_v34, %v2337_v18 }
 0xb45   : > { %v2354_v37 = vmax.f32 %v2352_v9, 0.0  ;;  %v2355_v38 = vmax.f32 %v2353_v36, 0.0 }
 0xb47   : > { %2368 = vrot.lane.b32.xlu0 %v2355_v38, %s4417_s3  ;;  %2366 = vrot.lane.b32.xlu1 %v2354_v37, %s4417_s3 }
 0xbb9   : > { %v2369_v8 = vpop.permute.xlu0 %2368  ;;  %v2367_v3 = vpop.permute.xlu1 %2366 }
 0xbba   : > { %v2373_v39 = vsel %vm1622_vm11, 0.0, %v2369_v8  ;;  %v2372_v54 = vsel %vm1622_vm11, 0.0, %v2367_v3 }
 0xbbb   : > { %v2375_v55 = vsel %vm1624_vm12, %v2373_v39, 0.0  ;;  %v4111_v56 = vsel %vm1624_vm12, %v2372_v54, 0.0 }
 0xbbc   : > { %v2379_v58 = vmul.f32 %v2375_v55, %v3858_v4  ;;  %v2378_v59 = vmul.f32 %v4111_v56, %v3858_v4  ;;  %v4134_v4 = vld [vmem:[%s4368_s22] sm:$0xff]  ;;  %v2377_v62 = vmul.f32 %v2375_v55, %v3668_v13  ;;  %v2376_v63 = vmul.f32 %v4111_v56, %v3668_v13  ;;  %v3461_v13 = vld [vmem:[%s4411_s1 + $0x38] sm:$0xff] }
 0xbbe   : > { %2392 = vrot.lane.b32.xlu0 %v2379_v58, %s4415_s5  ;;  %2390 = vrot.lane.b32.xlu1 %v2378_v59, %s4415_s5 }
 0xbc2   : > { %2384 = vrot.lane.b32.xlu0 %v2375_v55, %s4414_s29  ;;  %2382 = vrot.lane.b32.xlu1 %v4111_v56, %s4414_s29 }
 0xbc6   : > { %2398 = vperm.xlu0 %3449, %v2358_v60   ;;  %2403 = vperm.xlu1 %3450, %v2359_v61   ;;  %v3462_v60 = vld [vmem:[%s4411_s1 + $0x30] sm:$0xff]  ;;  %v3463_v61 = vld [vmem:[%s4411_s1 + $0x28] sm:$0xff] }
 0xbca   : > { %2666 = vrot.lane.b32.xlu0 %v4134_v4, %s3498_s11  ;;  %2668 = vrot.lane.b32.xlu1 %v4139_v40, %s3498_s11 }
 0xbce   : > { %2672 = vrot.lane.b32.xlu0 %v4134_v4, %s3497_s8  ;;  %1544 = vrot.lane.b32.xlu1 %v4148_v41, %s3498_s11 }
 0xbd2   : > { %2674 = vrot.lane.b32.xlu0 %v4139_v40, %s3497_s8  ;;  %2678 = vrot.lane.b32.xlu1 %v4134_v4, %s3496_s7 }
 0xbd6   : > { %2692 = vrot.lane.b32.xlu0 %v4161_v44, %s3498_s11  ;;  %1546 = vrot.lane.b32.xlu1 %v4166_v14, %s3498_s11 }
 0xbda   : > { %1550 = vrot.lane.b32.xlu0 %v4148_v41, %s3497_s8  ;;  %2680 = vrot.lane.b32.xlu1 %v4139_v40, %s3496_s7 }
 0xbde   : > { %2694 = vrot.lane.b32.xlu0 %v4179_v45, %s3498_s11  ;;  %2698 = vrot.lane.b32.xlu1 %v4161_v44, %s3497_s8 }
 0xbe2   : > { %1552 = vrot.lane.b32.xlu0 %v4166_v14, %s3497_s8  ;;  %1556 = vrot.lane.b32.xlu1 %v4148_v41, %s3496_s7 }
 0xbe6   : > { %1570 = vrot.lane.b32.xlu0 %v4192_v46, %s3498_s11  ;;  %2700 = vrot.lane.b32.xlu1 %v4179_v45, %s3497_s8 }
 0xbea   : > { %2704 = vrot.lane.b32.xlu0 %v4161_v44, %s3496_s7  ;;  %1558 = vrot.lane.b32.xlu1 %v4166_v14, %s3496_s7 }
 0xbee   : > { %1572 = vrot.lane.b32.xlu0 %v4205_v47, %s3498_s11  ;;  %1576 = vrot.lane.b32.xlu1 %v4192_v46, %s3497_s8 }
 0xbf2   : > { %2706 = vrot.lane.b32.xlu0 %v4179_v45, %s3496_s7  ;;  %1578 = vrot.lane.b32.xlu1 %v4205_v47, %s3497_s8 }
 0xbf6   : > { %1582 = vrot.lane.b32.xlu0 %v4192_v46, %s3496_s7  ;;  %1584 = vrot.lane.b32.xlu1 %v4205_v47, %s3496_s7 }
 0xbfa   : > { %2834 = vperm.xlu0 %3449, %v2741_v48   ;;  %2829 = vperm.xlu1 %3450, %v2740_v49   ;;  %v3464_v48 = vld [vmem:[%s4411_s1 + $0x20] sm:$0xff]  ;;  %v3465_v49 = vld [vmem:[%s4411_s1 + $0x18] sm:$0xff] }
 0xbfe   : > { %2922 = vperm.xlu0 %3449, %v2743_v50   ;;  %v3466_v50 = vld [vmem:[%s4411_s1 + $0x10] sm:$0xff] }
 0xc30   : > { %v2393_v51 = vpop.permute.xlu0 %2392  ;;  %v2391_v42 = vpop.permute.xlu1 %2390 }
 0xc31   : > { %3347 = vmatprep.subr.mxu1 %v2393_v51 }
 0xc32   : > { %3348 = vmatpush3.msra.mxu1 %v2393_v51  ;;  %v3467_v51 = vld [vmem:[%s4411_s1 + $0x8] sm:$0xff] }
 0xc33   : > { %3349 = vmatprep.subr.mxu1 %v2391_v42 }
 0xc34   : > { %v2385_v52 = vpop.permute.xlu0 %2384  ;;  %3350 = vmatpush3.msra.mxu1 %v2391_v42  ;;  %v2383_v53 = vpop.permute.xlu1 %2382  ;;  %v3468_v42 = vld [vmem:[%s4411_s1] sm:$0xff] }
 0xc35   : > { %3351 = vmatprep.subr.mxu1 %v2385_v52 }
 0xc36   : > { %3352 = vmatpush3.msra.mxu1 %v2385_v52 }
 0xc37   : > { %3353 = vmatprep.subr.mxu1 %v2383_v53 }
 0xc38   : > { %3354 = vmatpush3.msra.mxu1 %v2383_v53 }
 0xc39   : > { %3355 = vmatprep.subr.mxu1 %v2377_v62 }
 0xc3a   : > { %3356 = vmatpush3.msra.mxu1 %v2377_v62 }
 0xc3b   : > { %3357 = vmatprep.subr.mxu1 %v2376_v63 }
 0xc3c   : > { %3358 = vmatpush3.msra.mxu1 %v2376_v63 }
 0xc3d   : > { %3360 = vmatmul.mubr.msk.f32.vlgmr.msra.gmra.mxu1 %vm1237_vm10, %v2357_v1  ;;  %3381 = vmatprep.subr.mxu1 %v3485_v19 }
 0xc3e   : > { %3382 = vmatpush3.msk.msra.mxu1 %vm857_vm0, %v3795_v23  ;;  %3383 = vmatprep.mubr.msk.f32.mxu1 %vm3488_vm3, %v3485_v19  ;;  %vm3007_vm0 = vcmask 24576  }
 0xc3f   : > { %3386 = vmatprep.subr.mxu1 %v3461_v13 }
 0xc41   : > { %v2404_v0 = vpop.permute.xlu1 %2403  ;;  %v2399_v6 = vpop.permute.xlu0 %2398 }
 0xc45   : > { %v2667_v52 = vpop.permute.xlu0 %2666  ;;  %v2669_v53 = vpop.permute.xlu1 %2668 }
 0xc49   : > { %v2673_v62 = vpop.permute.xlu0 %2672  ;;  %v1545_v63 = vpop.permute.xlu1 %1544 }
 0xc4d   : > { %v2675_v1 = vpop.permute.xlu0 %2674 }
 0xcfd   : > { %v3361_v2 = vpop.f32.mrf.mxu1 }
 0xcfe   : > { %v4240_v5 = vadd.f32 %v3361_v2, %v2404_v0  ;;  %v2693_v0 = vpop.permute.xlu0 %2692 }
 0xcff   : > { %v2478_v7 = vpop.f32.mrf.mxu1 }
 0xd00   : > { %v2497_v10 = vmul.f32 %v4240_v5, %v4240_v5  ;;  %v4244_v12 = vadd.f32 %v2478_v7, %v2399_v6  ;;  %v2488_v23 = vsel %vm1046_vm5, %v4240_v5, 0.0 }
 0xd02   : > { %v2487_v16 = vsel %vm1046_vm5, %v4244_v12, 0.0  ;;  %v2496_v21 = vmul.f32 %v4244_v12, %v4244_v12  ;;  %v2499_v24 = vsel %vm1046_vm5, %v2497_v10, 0.0  ;;  %v1551_v6 = vpop.permute.xlu0 %1550 }
 0xd03   : > { %v2489_v22 = vadd.f32 %v2488_v23, %v2487_v16 }
 0xd04   : > { %v2498_v25 = vsel %vm1046_vm5, %v2496_v21, 0.0 }
 0xd05   : > { %v2490_v26 = vrot.slane %v2489_v22, 4  ;;  %v2500_v27 = vadd.f32 %v2499_v24, %v2498_v25 }
 0xd06   : > { %v2695_v10 = vpop.permute.xlu0 %2694 }
 0xd07   : > { %v2491_v28 = vadd.f32 %v2490_v26, %v2489_v22  ;;  %v2501_v29 = vrot.slane %v2500_v27, 4 }
 0xd09   : > { %v2492_v30 = vrot.slane %v2491_v28, 2  ;;  %v2502_v31 = vadd.f32 %v2501_v29, %v2500_v27  ;;  %v1597_v29 = vrot.slane %v3919_v43, %v3681_v20 }
 0xd0a   : > { %v1553_v16 = vpop.permute.xlu0 %1552 }
 0xd0b   : > { %v2493_v32 = vadd.f32 %v2492_v30, %v2491_v28  ;;  %v2503_v33 = vrot.slane %v2502_v31, 2  ;;  %v2684_v30 = vsel %vm1233_vm8, %v4134_v4, %v2667_v52  ;;  %v2710_v4 = vsel %vm1233_vm8, %v4161_v44, %v2693_v0 }
 0xd0d   : > { %v2494_v34 = vrot.slane %v2493_v32, 1  ;;  %v2504_v35 = vadd.f32 %v2503_v33, %v2502_v31  ;;  %v2685_v31 = vsel %vm1233_vm8, %v4139_v40, %v2669_v53  ;;  %v2711_v40 = vsel %vm1233_vm8, %v4179_v45, %v2695_v10 }
 0xd0e   : > { %v1571_v22 = vpop.permute.xlu0 %1570 }
 0xd0f   : > { %v2505_v18 = vrot.slane %v2504_v35, 1  ;;  %v2495_v9 = vadd.f32 %v2494_v34, %v2493_v32  ;;  %v1562_v32 = vsel %vm1233_vm8, %v4148_v41, %v1545_v63 }
 0xd11   : > { %v2506_v36 = vadd.f32 %v2505_v18, %v2504_v35  ;;  %v1598_v35 = vsub.f32 %v3875_v17, %v1597_v29  ;;  %v1599_v18 = vsub.f32 %v3871_v11, %v1597_v29  ;;  %v1564_v17 = vsel %vm1235_vm9, %v1562_v32, %v1551_v6 }
 0xd12   : > { %v2705_v25 = vpop.permute.xlu0 %2704  ;;  %v1588_v11 = vsel %vm1233_vm8, %v4192_v46, %v1571_v22  ;;  %v2738_v22 = vld [vmem:[%s4370_s24] sm:$0xff] }
 0xd13   : > { %v2507_v37 = vsel %vm1062_vm6, %v2495_v9, %v2506_v36 }
 0xd14   : > { %3379 = vmatmul.mubr.msk.f32.vlgmr.msra.gmra.mxu0 %vm1046_vm5, %v2507_v37  ;;  %v2686_v37 = vsel %vm1235_vm9, %v2684_v30, %v2673_v62 }
 0xd15   : > { %3409 = vmatprep.mubr.msk.f32.mxu0 %vm1233_vm8, %v2738_v22 }
 0xd16   : > { %v1573_v27 = vpop.permute.xlu0 %1572 }
 0xd1a   : > { %v2707_v33 = vpop.permute.xlu0 %2706 }
 0xdd4   : > { %v2577_v38 = vpop.f32.mrf.mxu0 }
 0xdd5   : > { %v2581_v8 = vmul.f32 0.00390625, %v2577_v38  ;;  %v2687_v38 = vsel %vm1235_vm9, %v2685_v31, %v2675_v1 }
 0xdd6   : > { %v3380_v3 = vpop.f32.mrf.mxu0 }
 0xdd7   : > { %v2582_v39 = vmul.f32 %v2581_v8, %v2581_v8 }
 0xdd9   : > { %v2584_v54 = vrot.slane %v2582_v39, 7 }
 0xddb   : > { %v2586_v55 = vsub.f32 %v2581_v8, %v2584_v54  ;;  %v1603_v54 = vrot.slane %v3919_v43, %v3672_v15 }
 0xddd   : > { %v2587_v56 = vmax.f32 %v2586_v55, 0.0  ;;  %v1604_v43 = vmul.f32 %v1603_v54, %v1598_v35 }
 0xddf   : > { %v2588_v57 = vadd.f32 1e-05, %v2587_v56 }
 0xde1   : > { %3459 = vrsqrt.f32 %v2588_v57  ;;  %v1583_v57 = vpop.permute.xlu0 %1582 }
 0xde5   : > { %v2835_v29 = vpop.permute.xlu0 %2834 }
 0xdee   : > { %v3460_v58 = vpop.eup %3459 }
 0xdef   : > { %v2590_v59 = vsel %vm1062_vm6, %v2581_v8, %v3460_v58 }
 0xdf0   : > { %3384 = vmatmul.mubr.msk.f32.vlgmr.msra.gmra.mxu1 %vm863_vm1, %v2590_v59 }
 0xdf1   : > { %3387 = vmatpush3.msra.mxu1 %v3461_v13  ;;  %v2679_v13 = vpop.permute.xlu1 %2678 }
 0xdf2   : > { %3388 = vmatprep.subr.mxu1 %v3462_v60 }
 0xdf3   : > { %3389 = vmatpush3.msra.mxu1 %v3462_v60 }
 0xdf4   : > { %3390 = vmatprep.subr.mxu1 %v3463_v61 }
 0xdf5   : > { %3391 = vmatpush3.msra.mxu1 %v3463_v61  ;;  %v1547_v2 = vpop.permute.xlu1 %1546 }
 0xdf6   : > { %3392 = vmatprep.subr.mxu1 %v3464_v48  ;;  %v1563_v9 = vsel %vm1233_vm8, %v4166_v14, %v1547_v2  ;;  %v1589_v14 = vsel %vm1233_vm8, %v4205_v47, %v1573_v27 }
 0xdf7   : > { %3393 = vmatpush3.msra.mxu1 %v3464_v48  ;;  %v1565_v3 = vsel %vm1235_vm9, %v1563_v9, %v1553_v16  ;;  %v1605_v48 = vmul.f32 %v1603_v54, %v1599_v18  ;;  %v2742_v9 = vld [vmem:[%s4372_s26] sm:$0x1] }
 0xdf8   : > { %3394 = vmatprep.subr.mxu1 %v3465_v49 }
 0xdf9   : > { %3395 = vmatpush3.msra.mxu1 %v3465_v49  ;;  %v2681_v7 = vpop.permute.xlu1 %2680 }
 0xdfa   : > { %3396 = vmatprep.subr.mxu1 %v3466_v50 }
 0xdfb   : > { %3397 = vmatpush3.msra.mxu1 %v3466_v50 }
 0xdfc   : > { %3398 = vmatprep.subr.mxu1 %v3467_v51 }
 0xdfd   : > { %3399 = vmatpush3.msra.mxu1 %v3467_v51  ;;  %v2699_v23 = vpop.permute.xlu1 %2698 }
 0xdfe   : > { %3400 = vmatprep.subr.mxu1 %v3468_v42  ;;  %v2712_v55 = vsel %vm1235_vm9, %v2710_v4, %v2699_v23 }
 0xdff   : > { %3401 = vmatpush3.msra.mxu1 %v3468_v42  ;;  %v2714_v51 = vsel %vm1237_vm10, %v2712_v55, %v2705_v25 }
 0xe01   : > { %v1557_v21 = vpop.permute.xlu1 %1556 }
 0xe02   : > { %v1566_v61 = vsel %vm1237_vm10, %v1564_v17, %v1557_v21 }
 0xe03   : > { %v1606_v62 = vmul.f32 %v1604_v43, %v1566_v61 }
 0xe05   : > { %v2701_v24 = vpop.permute.xlu1 %2700 }
 0xe06   : > { %v2713_v56 = vsel %vm1235_vm9, %v2711_v40, %v2701_v24 }
 0xe07   : > { %v2715_v42 = vsel %vm1237_vm10, %v2713_v56, %v2707_v33 }
 0xe09   : > { %v1559_v26 = vpop.permute.xlu1 %1558 }
 0xe0d   : > { %v1577_v28 = vpop.permute.xlu1 %1576 }
 0xe0e   : > { %v1590_v46 = vsel %vm1235_vm9, %v1588_v11, %v1577_v28  ;;  %v2739_v28 = vld [vmem:[%s4370_s24 + $0x8] sm:$0x3] }
 0xe0f   : > { %v1592_v52 = vsel %vm1237_vm10, %v1590_v46, %v1583_v57 }
 0xe10   : > { %v1608_v0 = vadd.f32 %v1606_v62, %v1592_v52 }
 0xe11   : > { %v1579_v34 = vpop.permute.xlu1 %1578 }
 0xe12   : > { %v1591_v47 = vsel %vm1235_vm9, %v1589_v14, %v1579_v34 }
 0xe15   : > { %v1585_v58 = vpop.permute.xlu1 %1584 }
 0xe16   : > { %v1593_v53 = vsel %vm1237_vm10, %v1591_v47, %v1585_v58 }
 0xe19   : > { %v2830_v32 = vpop.permute.xlu1 %2829 }
 0xeb0   : > { %v2660_v36 = vpop.f32.mrf.mxu1 }
 0xeb1   : > { %v2719_v41 = vrot.slane %v2660_v36, %v3681_v20  ;;  %v2725_v45 = vrot.slane %v2660_v36, %v3672_v15  ;;  %v1567_v15 = vsel %vm1237_vm10, %v1565_v3, %v1559_v26  ;;  %v2923_v36 = vpop.permute.xlu0 %2922 }
 0xeb2   : > { %v3385_v8 = vpop.f32.mrf.mxu1  ;;  %v1607_v63 = vmul.f32 %v1605_v48, %v1567_v15 }
 0xeb3   : > { %v2720_v44 = vsub.f32 %v4244_v12, %v2719_v41  ;;  %v2721_v39 = vsub.f32 %v4240_v5, %v2719_v41  ;;  %v2688_v12 = vsel %vm1237_vm10, %v2686_v37, %v2679_v13  ;;  %v2689_v5 = vsel %vm1237_vm10, %v2687_v38, %v2681_v7 }
 0xeb4   : > { %v1609_v2 = vadd.f32 %v1607_v63, %v1593_v53  ;;  %v2928_v37 = vrot.slane %v2923_v36, %v3681_v20 }
 0xeb5   : > { %v2726_v59 = vmul.f32 %v2725_v45, %v2720_v44  ;;  %v2727_v60 = vmul.f32 %v2725_v45, %v2721_v39 }
 0xeb7   : > { %v2728_v49 = vmul.f32 %v2726_v59, %v2688_v12  ;;  %v2729_v50 = vmul.f32 %v2727_v60, %v2689_v5 }
 0xeb9   : > { %v2730_v1 = vadd.f32 %v2728_v49, %v2714_v51  ;;  %v2731_v13 = vadd.f32 %v2729_v50, %v2715_v42 }
 0xebb   : > { %v2732_v6 = vmax.f32 %v2730_v1, 0.0  ;;  %v2733_v7 = vmax.f32 %v2731_v13, 0.0 }
 0xebd   : > { %v2735_v10 = vadd.f32 %v2733_v7, %v1609_v2  ;;  %v2734_v23 = vadd.f32 %v2732_v6, %v1608_v0 }
 0xebf   : > { %v2737_v16 = vmax.f32 %v2735_v10, 0.0  ;;  %v2736_v21 = vmax.f32 %v2734_v23, 0.0 }
 0xec1   : > { %3402 = vmatprep.mubr.msk.f32.mxu1 %vm1046_vm5, %v2736_v21 }
 0xec2   : > { %3403 = vmatmul.mubr.msk.f32.vlgmr.msra.gmra.mxu1 %vm1046_vm5, %v2737_v16 }
 0xf82   : > { %v3404_v24 = vpop.f32.mrf.mxu1 }
 0xf83   : > { %v2826_v25 = vmul.f32 0.0625, %v3404_v24 }
 0xf84   : > { %v2816_v26 = vpop.f32.mrf.mxu1 }
 0xf85   : > { %v2825_v27 = vmul.f32 0.0625, %v2816_v26  ;;  %3405 = vmatprep.subr.mxu0 %v2826_v25 }
 0xf86   : > { %3406 = vmatpush3.msra.mxu0 %v2826_v25 }
 0xf87   : > { %3407 = vmatprep.subr.mxu0 %v2825_v27 }
 0xf88   : > { %3408 = vmatpush3.msra.mxu0 %v2825_v27 }
 0xf89   : > { %3410 = vmatmul.mubr.msk.f32.vlgmr.msra.gmra.mxu0 %vm1233_vm8, %v2739_v28  ;;  %3412 = vmatprep.subr.mxu0 %v3485_v19 }
 0xf8a   : > { %3416 = vmatprep.mubr.msk.f32.mxu0 %vm3488_vm3, %v3485_v19 }
0x1049   : > { %v3411_v30 = vpop.f32.mrf.mxu0 }
0x104a   : > { %v2915_v31 = vadd.f32 %v3411_v30, %v2835_v29 }
0x104b   : > { %v2909_v33 = vpop.f32.mrf.mxu0 }
0x104c   : > { %v2919_v34 = vmax.f32 %v2915_v31, 0.0  ;;  %v2910_v35 = vadd.f32 %v2909_v33, %v2830_v32 }
0x104e   : > { %v2918_v18 = vmax.f32 %v2910_v35, 0.0  ;;  %3413 = vmatpush3.msk.msra.mxu0 %vm2933_vm14, %v2919_v34 }
0x104f   : > { %3414 = vmatprep.subr.mxu0 %v3485_v19 }
0x1050   : > { %3415 = vmatpush3.msra.mxu0 %v2918_v18 }
0x1051   : > { %3417 = vmatmul.mubr.msk.f32.vlgmr.msra.gmra.mxu0 %vm2929_vm15, %v2742_v9 }
0x1111   : > { %v3003_v4 = vpop.f32.mrf.mxu0 }
0x1112   : > { %v3004_v40 = vadd.f32 %v3003_v4, %v2928_v37 }
0x1113   : > { %v3418_v41 = vpop.f32.mrf.mxu0 }
0x1114   : > { %3008 = vst.msk [vmem:[%s840_s6] sm:$0x1] %vm3007_vm0, %v3004_v40 }
0x1115 PF: > { %s40_s9 = sadd.s32 1, %s3475_s9  }
0x1116   : > { %p37_p4 = scmp.ge.s32.totalorder %s40_s9, 4  }
0x1118   :  { %39 = sbr.rel (!%p37_p4) target bundleno = 14 (0xe), region = 162 }

</bundles_post_ra>
